<compile_context>
chip_gen: v7x
topology: tpu7x:2x2x1
jax: 0.10.0
libtpu: 0.0.40
codegen_flags: <defaults>
</compile_context>

<pallas_src>
import functools

import jax
import jax.numpy as jnp
from jax.experimental import pallas as pl
from jax.experimental.pallas import tpu as pltpu

IN_PLANES = 256      # demo-scale stand-in for Baseline.in_planes = 2048
NUM_CLASSES = 128
MARGIN = 0.01        # Linear.m
BN_EPS = 1e-5        # nn.BatchNorm1d default eps
NORM_EPS = 1e-12     # F.normalize default eps


# ---------------------------------------------------------------------------
# Kernels
# ---------------------------------------------------------------------------

def _finalize_pool(acc_ref, inv_hw):
    """Finish AdaptiveAvgPool2d(1) + F.normalize on the f32 accumulator."""
    pooled = acc_ref[...] * inv_hw                       # (tb, C), lane-dense C
    # F.normalize(p=2, dim=1, eps=1e-12) == x * rsqrt(max(sum(x^2), eps^2));
    # rsqrt goes to the EUP, keeping VALU slots free in the finalize step.
    sumsq = jnp.sum(pooled * pooled, axis=-1, keepdims=True)
    inv = jax.lax.rsqrt(jnp.maximum(sumsq, NORM_EPS * NORM_EPS))
    return pooled * inv


def _pool_triplet_kernel(x_ref, trip_ref, acc_ref, *, inv_hw):
    """Training pool pass: (tb, C, hw_tile) -> triplet_feat (tb, C)."""
    j = pl.program_id(1)

    @pl.when(j == 0)
    def _():
        acc_ref[...] = jnp.zeros_like(acc_ref)

    # Partial spatial sum for this HW tile: lane-axis reduce, f32 accumulation
    # without materializing an f32 copy of the (possibly bf16) input tile.
    acc_ref[...] += jnp.sum(x_ref[...], axis=-1, dtype=jnp.float32)

    @pl.when(j == pl.num_programs(1) - 1)
    def _():
        trip_ref[...] = _finalize_pool(acc_ref, inv_hw)


def _pool_test_kernel(x_ref, scale_ref, shift_ref, test_ref, acc_ref, *, inv_hw):
    """Eval pool pass: pool + L2-normalize + folded BatchNorm, fully fused."""
    j = pl.program_id(1)

    @pl.when(j == 0)
    def _():
        acc_ref[...] = jnp.zeros_like(acc_ref)

    acc_ref[...] += jnp.sum(x_ref[...], axis=-1, dtype=jnp.float32)

    @pl.when(j == pl.num_programs(1) - 1)
    def _():
        feat = _finalize_pool(acc_ref, inv_hw)
        test_ref[...] = feat * scale_ref[...] + shift_ref[...]


def _head_kernel(trip_ref, w_ref, gamma_ref, beta_ref, label_ref, cl_ref):
    """Training head: batch-stat BatchNorm1d + margin classifier (class tile)."""
    trip = trip_ref[...]                                   # (B, C) f32

    # BatchNorm1d (training): biased batch statistics over the batch dim.
    # (Recomputed per class tile; negligible next to the matmul.)
    mean = jnp.mean(trip, axis=0, keepdims=True)
    var = jnp.mean((trip - mean) ** 2, axis=0, keepdims=True)
    test = (trip - mean) * jax.lax.rsqrt(var + BN_EPS) * gamma_ref[...] + beta_ref[...]

    # Margin classifier: cosine = test @ W^T for this class tile. bf16 inputs,
    # f32 accumulation (MXU-native on all generations).
    cosine = jnp.dot(test.astype(w_ref.dtype), w_ref[...],
                     preferred_element_type=jnp.float32)   # (B, tn)

    # one_hot*(cosine - m) + (1-one_hot)*cosine == cosine - m*one_hot,
    # with the one-hot built from a single broadcast compare (no per-row loop).
    tn = cosine.shape[1]
    cols = pl.program_id(0) * tn + jax.lax.broadcasted_iota(
        jnp.int32, cosine.shape, 1)
    one_hot = (cols == label_ref[...]).astype(jnp.float32)  # (B,1) lane-broadcast
    cl_ref[...] = cosine - MARGIN * one_hot


# ---------------------------------------------------------------------------
# Tiling / VMEM helpers
# ---------------------------------------------------------------------------

def _vmem_capacity():
    try:
        return int(pltpu.get_tpu_info().vmem_capacity_bytes)
    except Exception:
        return 64 << 20   # conservative (v7x per-TC physical VMEM)


def _input_vmem_budget(cap):
    """Budget for the double-buffered input tiles of the pooling pass.
    ~1/4 of physical VMEM, capped at 24 MiB (v5e/v6e: 128 MiB -> 24 MiB,
    v7x: 64 MiB -> 16 MiB). We always pass an explicit vmem_limit_bytes, so
    exceeding the scoped-VMEM defaults is fine."""
    return max(4 << 20, min(cap // 4, 24 << 20))


def _divisors(n):
    return [d for d in range(1, n + 1) if n % d == 0]


def _valid_batch_tiles(batch):
    """(tb, C) output blocks need tb % 8 == 0 or tb == batch."""
    return sorted(tb for tb in _divisors(batch) if tb % 8 == 0 or tb == batch)


def _valid_hw_tiles(hw):
    """Input blocks (tb, C, hw_tile): hw_tile % 128 == 0 or hw_tile == hw."""
    tiles = [t for t in _divisors(hw) if t % 128 == 0]
    if hw not in tiles:
        tiles.append(hw)
    return sorted(tiles)


def _pick_pool_tiles(batch, channels, hw, itemsize, budget):
    """Pick (batch_tile, hw_tile) so 2 double-buffered input tiles fit the
    budget, preferring >=2 batch grid steps (v7x megacore / pipeline priming),
    then the largest tile to amortize per-grid-step overhead."""
    tbs = _valid_batch_tiles(batch)
    hws = _valid_hw_tiles(hw)
    candidates = [(tb, h) for tb in tbs for h in hws
                  if 2 * tb * channels * h * itemsize <= budget]
    if not candidates:
        # Smallest legal tile; the explicit vmem_limit_bytes covers it.
        return tbs[0], hws[0]
    return max(candidates, key=lambda c: ((batch // c[0]) >= 2, c[0], c[1]))


def _pick_class_tile(num_classes, channels, budget):
    """Largest class tile (multiple of 128, dividing num_classes) whose
    double-buffered bf16 weight tile fits the budget."""
    tiles = [t for t in _divisors(num_classes) if t % 128 == 0]
    if not tiles:
        return num_classes
    fitting = [t for t in tiles if 2 * channels * t * 2 <= budget]
    return max(fitting) if fitting else min(tiles)


def _pool_vmem_limit(tb, channels, hw_tile, itemsize, with_bn, cap):
    need = 2 * tb * channels * hw_tile * itemsize   # double-buffered input
    need += 2 * tb * channels * 4                   # double-buffered output rows
    need += tb * channels * 4                       # f32 accumulator scratch
    if with_bn:
        need += 2 * 2 * channels * 4                # folded scale/shift rows
    return int(min(max(need + (4 << 20), 16 << 20), int(cap * 0.9)))


def _head_vmem_limit(batch, channels, tn, cap):
    need = 2 * batch * channels * 4                 # triplet features
    need += 2 * channels * tn * 2                   # bf16 weight tile
    need += 2 * 2 * channels * 4                    # gamma / beta
    need += 2 * batch * 4                           # labels
    need += 2 * batch * tn * 4                      # output tile
    return int(min(max(need + (4 << 20), 16 << 20), int(cap * 0.9)))


# ---------------------------------------------------------------------------
# Wrapper
# ---------------------------------------------------------------------------

def prepare_params(params):
    """One-time parameter preparation (do NOT redo per forward call):
    pre-transpose the classifier weight to MXU (K, N) layout in bf16 and fold
    the eval-mode BatchNorm into a single scale/shift."""
    c = params["bn_weight"].shape[0]
    gamma = params["bn_weight"].reshape(1, c).astype(jnp.float32)
    beta = params["bn_bias"].reshape(1, c).astype(jnp.float32)
    rmean = params["bn_running_mean"].reshape(1, c).astype(jnp.float32)
    rvar = params["bn_running_var"].reshape(1, c).astype(jnp.float32)
    scale = gamma * jax.lax.rsqrt(rvar + BN_EPS)
    shift = beta - rmean * scale
    return {
        "w_t": params["fc_weight"].astype(jnp.bfloat16).T,   # (C, num_classes)
        "gamma": gamma,
        "beta": beta,
        "eval_scale": scale,
        "eval_shift": shift,
    }


def baseline_forward(feat1, target, prep, *, training=True):
    """feat1: backbone output, (B, C, H, W) NCHW (f32 or bf16). The feature map
    is consumed in NCHW layout directly (free reshape to (B, C, HW)); the pool
    accumulates in f32 either way."""
    B, C, H, W = feat1.shape
    hw = H * W
    x = feat1.reshape(B, C, hw)   # contiguous reshape: no HBM copy

    cap = _vmem_capacity()
    tb, thw = _pick_pool_tiles(B, C, hw, x.dtype.itemsize, _input_vmem_budget(cap))
    grid = (B // tb, hw // thw)

    x_spec = pl.BlockSpec((tb, C, thw), lambda i, j: (i, 0, j))
    row_spec = pl.BlockSpec((tb, C), lambda i, j: (i, 0))
    bcast_spec = pl.BlockSpec((1, C), lambda i, j: (0, 0))
    pool_scratch = [pltpu.VMEM((tb, C), jnp.float32)]

    def pool_cparams(with_bn):
        return pltpu.CompilerParams(
            dimension_semantics=("parallel", "arbitrary"),
            vmem_limit_bytes=_pool_vmem_limit(tb, C, thw, x.dtype.itemsize,
                                              with_bn, cap))

    if training:
        # Stage 1: pipelined pool + L2-normalize over (batch, HW) grid.
        triplet = pl.pallas_call(
            functools.partial(_pool_triplet_kernel, inv_hw=1.0 / hw),
            out_shape=jax.ShapeDtypeStruct((B, C), jnp.float32),
            grid=grid,
            in_specs=[x_spec],
            out_specs=row_spec,
            scratch_shapes=pool_scratch,
            compiler_params=pool_cparams(with_bn=False),
        )(x)

        # Stage 2: batch-stat BN + margin classifier, gridded over classes.
        num_classes = prep["w_t"].shape[1]
        tn = _pick_class_tile(num_classes, C, 8 << 20)
        labels = target.reshape(B, 1).astype(jnp.int32)
        cl = pl.pallas_call(
            _head_kernel,
            out_shape=jax.ShapeDtypeStruct((B, num_classes), jnp.float32),
            grid=(num_classes // tn,),
            in_specs=[pl.BlockSpec((B, C), lambda j: (0, 0)),
                      pl.BlockSpec((C, tn), lambda j: (0, j)),
                      pl.BlockSpec((1, C), lambda j: (0, 0)),
                      pl.BlockSpec((1, C), lambda j: (0, 0)),
                      pl.BlockSpec((B, 1), lambda j: (0, 0))],
            out_specs=pl.BlockSpec((B, tn), lambda j: (0, j)),
            compiler_params=pltpu.CompilerParams(
                dimension_semantics=("parallel",),
                vmem_limit_bytes=_head_vmem_limit(B, C, tn, cap)),
        )(triplet, prep["w_t"], prep["gamma"], prep["beta"], labels)

        return [cl], [triplet]      # matches `return ([cl_1], [triplet_1])`

    # Eval: single fully fused, pipelined pass (pool + normalize + folded BN).
    test_feat = pl.pallas_call(
        functools.partial(_pool_test_kernel, inv_hw=1.0 / hw),
        out_shape=jax.ShapeDtypeStruct((B, C), jnp.float32),
        grid=grid,
        in_specs=[x_spec, bcast_spec, bcast_spec],
        out_specs=row_spec,
        scratch_shapes=pool_scratch,
        compiler_params=pool_cparams(with_bn=True),
    )(x, prep["eval_scale"], prep["eval_shift"])
    return test_feat


# ---------------------------------------------------------------------------
# Pure-JAX reference (semantics check)
# ---------------------------------------------------------------------------

def _reference(feat1, target, params, training):
    pooled = jnp.mean(feat1.astype(jnp.float32), axis=(2, 3))           # (B, C)
    norm = jnp.sqrt(jnp.sum(pooled * pooled, axis=1, keepdims=True))
    trip = pooled / jnp.maximum(norm, NORM_EPS)
    gamma = params["bn_weight"]
    beta = params["bn_bias"]
    if training:
        mean = jnp.mean(trip, axis=0, keepdims=True)
        var = jnp.mean((trip - mean) ** 2, axis=0, keepdims=True)
        test = (trip - mean) / jnp.sqrt(var + BN_EPS) * gamma + beta
        cosine = test @ params["fc_weight"].T
        one_hot = jax.nn.one_hot(target, cosine.shape[1], dtype=jnp.float32)
        return cosine - MARGIN * one_hot, trip
    scale = gamma / jnp.sqrt(params["bn_running_var"] + BN_EPS)
    shift = beta - params["bn_running_mean"] * scale
    return trip * scale + shift


if __name__ == "__main__":
    key = jax.random.PRNGKey(0)
    k_feat, k_label, k_w = jax.random.split(key, 3)

    B, C, H, W = 2, IN_PLANES, 8, 8
    feat1 = jax.random.normal(k_feat, (B, C, H, W), jnp.float32)
    target = jax.random.randint(k_label, (B,), 0, NUM_CLASSES)

    # Deterministic parameter init mirroring the PyTorch init functions:
    #   Linear.weight ~ N(0, 0.001^2)  (weights_init_classifier)
    #   BN.weight = 1, BN.bias = 0     (weights_init_kaiming)
    #   BN running stats at their defaults (mean=0, var=1)
    params = {
        "fc_weight": 0.001 * jax.random.normal(k_w, (NUM_CLASSES, C), jnp.float32),
        "bn_weight": jnp.ones((C,), jnp.float32),
        "bn_bias": jnp.zeros((C,), jnp.float32),
        "bn_running_mean": jnp.zeros((C,), jnp.float32),
        "bn_running_var": jnp.ones((C,), jnp.float32),
    }
    prep = prepare_params(params)   # one-time: bf16 (C,N) weight, folded eval BN

    cl_list, trip_list = baseline_forward(feat1, target, prep, training=True)
    test_feat = baseline_forward(feat1, target, prep, training=False)
    jax.block_until_ready((cl_list[0], trip_list[0], test_feat))

    # Semantics check against a pure-JAX reference (bf16 matmul -> loose tol).
    cl_ref, trip_ref = _reference(feat1, target, params, training=True)
    test_ref = _reference(feat1, target, params, training=False)
    if not bool(jnp.allclose(trip_list[0], trip_ref, atol=1e-5, rtol=1e-5)):
        raise RuntimeError("triplet_feat mismatch vs reference")
    if not bool(jnp.allclose(test_feat, test_ref, atol=1e-5, rtol=1e-5)):
        raise RuntimeError("test_feat mismatch vs reference")
    if not bool(jnp.allclose(cl_list[0], cl_ref, atol=5e-3, rtol=0.0)):
        raise RuntimeError("cl_feat mismatch vs reference")

    print("KERNEL_OK")
</pallas_src>

<mosaic_0001>
module attributes {stable_mosaic.version = 11 : i64} {
  func.func @_pool_triplet_kernel(%arg0: i32, %arg1: i32, %arg2: memref<2x256x64xf32, #tpu.memory_space<vmem>>, %arg3: memref<2x256xf32, #tpu.memory_space<vmem>>, %arg4: memref<2x256xf32, #tpu.memory_space<vmem>>) attributes {dimension_semantics = [#tpu.dimension_semantics<parallel>, #tpu.dimension_semantics<arbitrary>], iteration_bounds = array<i64: 1, 1>, scalar_prefetch = 0 : i64, scratch_operands = 1 : i64, tpu.core_type = #tpu.core_type<tc>, window_params = [{transform_indices = @transform_0, window_bounds = array<i64: 2, 256, 64>}, {transform_indices = @transform_1, window_bounds = array<i64: 2, 256>}]} {
    %c0_i32 = arith.constant 0 : i32
    %0 = arith.cmpi eq, %arg1, %c0_i32 : i32
    %1 = arith.extui %0 : i1 to i32
    %c0_i32_0 = arith.constant 0 : i32
    %2 = arith.cmpi ne, %1, %c0_i32_0 : i32
    scf.if %2 {
      %cst_9 = arith.constant 0.000000e+00 : f32
      %11 = vector.broadcast %cst_9 : f32 to vector<2x256xf32>
      %c0_10 = arith.constant 0 : index
      %c0_11 = arith.constant 0 : index
      %12 = vector.load %arg4[%c0_10, %c0_11] : memref<2x256xf32, #tpu.memory_space<vmem>>, vector<2x256xf32>
      tpu.vector_store %arg4[%c0_10, %c0_11], %11 {strides = array<i32>} : memref<2x256xf32, #tpu.memory_space<vmem>>, vector<2x256xf32>,
    } else {
    }
    %c0 = arith.constant 0 : index
    %c0_1 = arith.constant 0 : index
    %3 = vector.load %arg4[%c0, %c0_1] : memref<2x256xf32, #tpu.memory_space<vmem>>, vector<2x256xf32>
    %c0_2 = arith.constant 0 : index
    %c0_3 = arith.constant 0 : index
    %c0_4 = arith.constant 0 : index
    %4 = vector.load %arg2[%c0_2, %c0_3, %c0_4] : memref<2x256x64xf32, #tpu.memory_space<vmem>>, vector<2x256x64xf32>
    %cst = arith.constant dense<0.000000e+00> : vector<2x256xf32>
    %5 = vector.multi_reduction <add>, %4, %cst [2] : vector<2x256x64xf32> to vector<2x256xf32>
    %6 = arith.addf %3, %5 : vector<2x256xf32>
    %c0_5 = arith.constant 0 : index
    %c0_6 = arith.constant 0 : index
    %7 = vector.load %arg4[%c0_5, %c0_6] : memref<2x256xf32, #tpu.memory_space<vmem>>, vector<2x256xf32>
    tpu.vector_store %arg4[%c0_5, %c0_6], %6 {strides = array<i32>} : memref<2x256xf32, #tpu.memory_space<vmem>>, vector<2x256xf32>,
    %c0_i32_7 = arith.constant 0 : i32
    %8 = arith.cmpi eq, %arg1, %c0_i32_7 : i32
    %9 = arith.extui %8 : i1 to i32
    %c0_i32_8 = arith.constant 0 : i32
    %10 = arith.cmpi ne, %9, %c0_i32_8 : i32
    scf.if %10 {
      %c0_9 = arith.constant 0 : index
      %c0_10 = arith.constant 0 : index
      %11 = vector.load %arg4[%c0_9, %c0_10] : memref<2x256xf32, #tpu.memory_space<vmem>>, vector<2x256xf32>
      %cst_11 = arith.constant 1.562500e-02 : f32
      %12 = vector.broadcast %cst_11 : f32 to vector<2x256xf32>
      %13 = arith.mulf %11, %12 : vector<2x256xf32>
      %14 = arith.mulf %13, %13 : vector<2x256xf32>
      %cst_12 = arith.constant dense<0.000000e+00> : vector<2xf32>
      %15 = vector.multi_reduction <add>, %14, %cst_12 [1] : vector<2x256xf32> to vector<2xf32>
      %16 = vector.shape_cast %15 : vector<2xf32> to vector<2x1xf32>
      %cst_13 = arith.constant 1.000000e-24 : f32
      %17 = vector.broadcast %cst_13 : f32 to vector<2x1xf32>
      %18 = arith.maximumf %16, %17 : vector<2x1xf32>
      %19 = math.rsqrt %18 : vector<2x1xf32>
      %20 = vector.broadcast %19 : vector<2x1xf32> to vector<2x256xf32>
      %21 = arith.mulf %13, %20 : vector<2x256xf32>
      %c0_14 = arith.constant 0 : index
      %c0_15 = arith.constant 0 : index
      %22 = vector.load %arg3[%c0_14, %c0_15] : memref<2x256xf32, #tpu.memory_space<vmem>>, vector<2x256xf32>
      tpu.vector_store %arg3[%c0_14, %c0_15], %21 {strides = array<i32>} : memref<2x256xf32, #tpu.memory_space<vmem>>, vector<2x256xf32>,
    } else {
    }
    return
  }
  func.func @transform_0(%arg0: i32, %arg1: i32) -> (i32, i32, i32) {
    %c0_i32 = arith.constant 0 : i32
    %c0_i32_0 = arith.constant 0 : i32
    return %arg0, %c0_i32, %arg1 : i32, i32, i32
  }
  func.func @transform_1(%arg0: i32, %arg1: i32) -> (i32, i32) {
    %c0_i32 = arith.constant 0 : i32
    %c0_i32_0 = arith.constant 0 : i32
    return %arg0, %c0_i32 : i32, i32
  }
}

</mosaic_0001>

<bundles_post_ra>
// kernel: tpu_custom_call.1
= control target key start
LH: loop header
LB: loop body
LE: loop exit
PB: predicated region body
PF: predicated region fallthrough
CT: control target
= control target key end

     0   :  { %vm79_vm0 = vcmask 523264   ;;  %v3856_v28 = vmov 0   ;;  %s5268_s0 = inlined_call_operand.vmem [shape: f32[2,256,64], index: 0, kind: input, shape index: {}]   ;;  %s5269_s1 = inlined_call_operand.hbm [shape: f32[2,256], index: 1, kind: output, shape index: {}]  }
   0x1   :  { %v17_v0 = vld [vmem:[%s5268_s0 + $0x10] sm:$0xff]  ;;  %v15_v1 = vld [vmem:[%s5268_s0] sm:$0xff]  ;;  %v18_v2 = vld [vmem:[%s5268_s0 + $0x18] sm:$0xff]  ;;  %3828 = vset.pattern.permute.xlu0 %v3856_v28  ;;  %3829 = vset.pattern.permute.xlu1 %v3856_v28 }
   0x2   :  { %v86_v3 = vsel %vm79_vm0, %v17_v0, 0.0  ;;  %v80_v4 = vsel %vm79_vm0, %v15_v1, 0.0  ;;  %v16_v5 = vld [vmem:[%s5268_s0 + $0x8] sm:$0xff]  ;;  %v89_v6 = vsel %vm79_vm0, %v18_v2, 0.0  ;;  %v19_v9 = vld [vmem:[%s5268_s0 + $0x20] sm:$0xff]  ;;  %v22_v12 = vld [vmem:[%s5268_s0 + $0x38] sm:$0xff] }
   0x3   :  { %87 = vadd.xlane.f32.xlu1 %v86_v3  ;;  %81 = vadd.xlane.f32.xlu0 %v80_v4  ;;  %v83_v7 = vsel %vm79_vm0, %v16_v5, 0.0  ;;  %v20_v8 = vld [vmem:[%s5268_s0 + $0x28] sm:$0xff]  ;;  %v92_v11 = vsel %vm79_vm0, %v19_v9, 0.0  ;;  %v21_v13 = vld [vmem:[%s5268_s0 + $0x30] sm:$0xff]  ;;  %v101_v14 = vsel %vm79_vm0, %v22_v12, 0.0  ;;  %v23_v17 = vld [vmem:[%s5268_s0 + $0x40] sm:$0xff] }
   0x4   :  { %v95_v10 = vsel %vm79_vm0, %v20_v8, 0.0  ;;  %v98_v15 = vsel %vm79_vm0, %v21_v13, 0.0  ;;  %v24_v16 = vld [vmem:[%s5268_s0 + $0x48] sm:$0xff]  ;;  %v104_v19 = vsel %vm79_vm0, %v23_v17, 0.0  ;;  %v26_v20 = vld [vmem:[%s5268_s0 + $0x58] sm:$0xff]  ;;  %v25_v21 = vld [vmem:[%s5268_s0 + $0x50] sm:$0xff] }
   0x5   :  { %v107_v18 = vsel %vm79_vm0, %v24_v16, 0.0  ;;  %v113_v22 = vsel %vm79_vm0, %v26_v20, 0.0  ;;  %v110_v23 = vsel %vm79_vm0, %v25_v21, 0.0  ;;  %v28_v24 = vld [vmem:[%s5268_s0 + $0x68] sm:$0xff]  ;;  %v27_v25 = vld [vmem:[%s5268_s0 + $0x60] sm:$0xff] }
   0x6   :  { %v119_v26 = vsel %vm79_vm0, %v28_v24, 0.0  ;;  %v116_v27 = vsel %vm79_vm0, %v27_v25, 0.0 }
   0x7   :  { %90 = vadd.xlane.f32.xlu1 %v89_v6  ;;  %84 = vadd.xlane.f32.xlu0 %v83_v7 }
   0xb   :  { %96 = vadd.xlane.f32.xlu1 %v95_v10  ;;  %93 = vadd.xlane.f32.xlu0 %v92_v11 }
   0xf   :  { %102 = vadd.xlane.f32.xlu1 %v101_v14  ;;  %99 = vadd.xlane.f32.xlu0 %v98_v15 }
  0x13   :  { %108 = vadd.xlane.f32.xlu1 %v107_v18  ;;  %105 = vadd.xlane.f32.xlu0 %v104_v19 }
  0x17   :  { %114 = vadd.xlane.f32.xlu1 %v113_v22  ;;  %111 = vadd.xlane.f32.xlu0 %v110_v23 }
  0x18   :  { %6 = vsyncpa [#allocation4], 0  ;;  %v30_v29 = vld [vmem:[%s5268_s0 + $0x78] sm:$0xff]  ;;  %v29_v30 = vld [vmem:[%s5268_s0 + $0x70] sm:$0xff]  ;;  %vm3419_vm1 = vcmask 130112   ;;  %vm3426_vm2 = vcmask 195712  }
  0x19   :  { %v125_v31 = vsel %vm79_vm0, %v30_v29, 0.0  ;;  %v122_v32 = vsel %vm79_vm0, %v29_v30, 0.0  ;;  %v32_v33 = vld [vmem:[%s5268_s0 + $0x88] sm:$0xff]  ;;  %v31_v34 = vld [vmem:[%s5268_s0 + $0x80] sm:$0xff]  ;;  %v34_v37 = vld [vmem:[%s5268_s0 + $0x98] sm:$0xff]  ;;  %vm3433_vm3 = vcmask 261312  }
  0x1a   :  { %v131_v35 = vsel %vm79_vm0, %v32_v33, 0.0  ;;  %v128_v36 = vsel %vm79_vm0, %v31_v34, 0.0  ;;  %v33_v38 = vld [vmem:[%s5268_s0 + $0x90] sm:$0xff]  ;;  %v137_v39 = vsel %vm79_vm0, %v34_v37, 0.0  ;;  %v36_v41 = vld [vmem:[%s5268_s0 + $0xa8] sm:$0xff]  ;;  %v35_v42 = vld [vmem:[%s5268_s0 + $0xa0] sm:$0xff] }
  0x1b   :  { %120 = vadd.xlane.f32.xlu1 %v119_v26  ;;  %117 = vadd.xlane.f32.xlu0 %v116_v27  ;;  %v134_v40 = vsel %vm79_vm0, %v33_v38, 0.0  ;;  %v143_v43 = vsel %vm79_vm0, %v36_v41, 0.0  ;;  %v140_v44 = vsel %vm79_vm0, %v35_v42, 0.0  ;;  %v38_v45 = vld [vmem:[%s5268_s0 + $0xb8] sm:$0xff]  ;;  %v37_v46 = vld [vmem:[%s5268_s0 + $0xb0] sm:$0xff]  ;;  %v40_v49 = vld [vmem:[%s5268_s0 + $0xc8] sm:$0xff] }
  0x1c   :  { %v149_v47 = vsel %vm79_vm0, %v38_v45, 0.0  ;;  %v146_v48 = vsel %vm79_vm0, %v37_v46, 0.0  ;;  %v39_v50 = vld [vmem:[%s5268_s0 + $0xc0] sm:$0xff]  ;;  %v155_v51 = vsel %vm79_vm0, %v40_v49, 0.0  ;;  %v42_v53 = vld [vmem:[%s5268_s0 + $0xd8] sm:$0xff]  ;;  %v41_v54 = vld [vmem:[%s5268_s0 + $0xd0] sm:$0xff] }
  0x1d   :  { %v152_v52 = vsel %vm79_vm0, %v39_v50, 0.0  ;;  %v161_v55 = vsel %vm79_vm0, %v42_v53, 0.0  ;;  %v158_v56 = vsel %vm79_vm0, %v41_v54, 0.0  ;;  %v44_v57 = vld [vmem:[%s5268_s0 + $0xe8] sm:$0xff]  ;;  %v43_v58 = vld [vmem:[%s5268_s0 + $0xe0] sm:$0xff]  ;;  %v46_v61 = vld [vmem:[%s5268_s0 + $0xf8] sm:$0xff] }
  0x1e   :  { %v167_v59 = vsel %vm79_vm0, %v44_v57, 0.0  ;;  %v164_v60 = vsel %vm79_vm0, %v43_v58, 0.0  ;;  %v45_v62 = vld [vmem:[%s5268_s0 + $0xf0] sm:$0xff]  ;;  %v173_v63 = vsel %vm79_vm0, %v46_v61, 0.0  ;;  %v48_v1 = vld [vmem:[%s5268_s0 + $0x108] sm:$0xff]  ;;  %v47_v2 = vld [vmem:[%s5268_s0 + $0x100] sm:$0xff] }
  0x1f   :  { %126 = vadd.xlane.f32.xlu1 %v125_v31  ;;  %123 = vadd.xlane.f32.xlu0 %v122_v32  ;;  %v170_v0 = vsel %vm79_vm0, %v45_v62, 0.0  ;;  %v179_v3 = vsel %vm79_vm0, %v48_v1, 0.0  ;;  %v176_v4 = vsel %vm79_vm0, %v47_v2, 0.0  ;;  %v50_v5 = vld [vmem:[%s5268_s0 + $0x118] sm:$0xff]  ;;  %v49_v6 = vld [vmem:[%s5268_s0 + $0x110] sm:$0xff]  ;;  %v52_v9 = vld [vmem:[%s5268_s0 + $0x128] sm:$0xff] }
  0x20   :  { %v185_v7 = vsel %vm79_vm0, %v50_v5, 0.0  ;;  %v182_v8 = vsel %vm79_vm0, %v49_v6, 0.0  ;;  %v51_v10 = vld [vmem:[%s5268_s0 + $0x120] sm:$0xff]  ;;  %v191_v11 = vsel %vm79_vm0, %v52_v9, 0.0  ;;  %v54_v13 = vld [vmem:[%s5268_s0 + $0x138] sm:$0xff]  ;;  %v53_v14 = vld [vmem:[%s5268_s0 + $0x130] sm:$0xff] }
  0x21   :  { %v188_v12 = vsel %vm79_vm0, %v51_v10, 0.0  ;;  %v197_v15 = vsel %vm79_vm0, %v54_v13, 0.0  ;;  %v194_v16 = vsel %vm79_vm0, %v53_v14, 0.0  ;;  %v56_v17 = vld [vmem:[%s5268_s0 + $0x148] sm:$0xff]  ;;  %v55_v18 = vld [vmem:[%s5268_s0 + $0x140] sm:$0xff]  ;;  %v58_v21 = vld [vmem:[%s5268_s0 + $0x158] sm:$0xff] }
  0x22   :  { %v203_v19 = vsel %vm79_vm0, %v56_v17, 0.0  ;;  %v200_v20 = vsel %vm79_vm0, %v55_v18, 0.0  ;;  %v57_v22 = vld [vmem:[%s5268_s0 + $0x150] sm:$0xff]  ;;  %v209_v23 = vsel %vm79_vm0, %v58_v21, 0.0  ;;  %v60_v25 = vld [vmem:[%s5268_s0 + $0x168] sm:$0xff]  ;;  %v59_v26 = vld [vmem:[%s5268_s0 + $0x160] sm:$0xff] }
  0x23   :  { %132 = vadd.xlane.f32.xlu1 %v131_v35  ;;  %129 = vadd.xlane.f32.xlu0 %v128_v36  ;;  %v206_v24 = vsel %vm79_vm0, %v57_v22, 0.0  ;;  %v215_v27 = vsel %vm79_vm0, %v60_v25, 0.0  ;;  %v212_v28 = vsel %vm79_vm0, %v59_v26, 0.0  ;;  %v62_v29 = vld [vmem:[%s5268_s0 + $0x178] sm:$0xff]  ;;  %v61_v30 = vld [vmem:[%s5268_s0 + $0x170] sm:$0xff]  ;;  %v64_v33 = vld [vmem:[%s5268_s0 + $0x188] sm:$0xff] }
  0x24   :  { %v221_v31 = vsel %vm79_vm0, %v62_v29, 0.0  ;;  %v218_v32 = vsel %vm79_vm0, %v61_v30, 0.0  ;;  %v63_v34 = vld [vmem:[%s5268_s0 + $0x180] sm:$0xff]  ;;  %v227_v35 = vsel %vm79_vm0, %v64_v33, 0.0  ;;  %v65_v37 = vld [vmem:[%s5268_s0 + $0x190] sm:$0xff]  ;;  %v66_v38 = vld [vmem:[%s5268_s0 + $0x198] sm:$0xff] }
  0x25   :  { %v224_v36 = vsel %vm79_vm0, %v63_v34, 0.0  ;;  %v67_v41 = vld [vmem:[%s5268_s0 + $0x1a0] sm:$0xff]  ;;  %v68_v42 = vld [vmem:[%s5268_s0 + $0x1a8] sm:$0xff]  ;;  %v69_v45 = vld [vmem:[%s5268_s0 + $0x1b0] sm:$0xff]  ;;  %v3857_v1 = vmov 269488144  }
  0x26   :  { %v70_v46 = vld [vmem:[%s5268_s0 + $0x1b8] sm:$0xff]  ;;  %v71_v49 = vld [vmem:[%s5268_s0 + $0x1c0] sm:$0xff]  ;;  %v72_v50 = vld [vmem:[%s5268_s0 + $0x1c8] sm:$0xff]  ;;  %v337_v2 = vunpack.c.l.s4 %v3857_v1  ;;  %v3859_v6 = vmov 1414812756   ;;  %vm3440_vm4 = vcmask 326912  }
  0x27   :  { %138 = vadd.xlane.f32.xlu1 %v137_v39  ;;  %135 = vadd.xlane.f32.xlu0 %v134_v40  ;;  %v230_v39 = vsel %vm79_vm0, %v65_v37, 0.0  ;;  %v233_v40 = vsel %vm79_vm0, %v66_v38, 0.0  ;;  %v73_v53 = vld [vmem:[%s5268_s0 + $0x1d0] sm:$0xff]  ;;  %v74_v54 = vld [vmem:[%s5268_s0 + $0x1d8] sm:$0xff]  ;;  %v75_v57 = vld [vmem:[%s5268_s0 + $0x1e0] sm:$0xff]  ;;  %vm3447_vm5 = vcmask 392512  }
  0x28   :  { %v76_v58 = vld [vmem:[%s5268_s0 + $0x1e8] sm:$0xff]  ;;  %v77_v61 = vld [vmem:[%s5268_s0 + $0x1f0] sm:$0xff]  ;;  %v78_v62 = vld [vmem:[%s5268_s0 + $0x1f8] sm:$0xff]  ;;  %v338_v10 = vunpack.c.0.s8 %v337_v2  ;;  %vm3454_vm6 = vcmask 458112   ;;  %vm3461_vm7 = vcmask 523712   ;;  %vm3468_vm8 = vcmask 589312  }
  0x29   :  { %vm3475_vm9 = vcmask 654912   ;;  %vm3482_vm10 = vcmask 720512   ;;  %vm3489_vm11 = vcmask 786112   ;;  %vm3496_vm12 = vcmask 851712   ;;  %s3863_s0 = smov [#allocation3]  }
  0x2a   :  { %vm3503_vm13 = vcmask 917312   ;;  %vm3510_vm14 = vcmask 982912   ;;  %vm3517_vm15 = vcmask 1048512   ;;  %s3812_s18 = sshll.u32 %s3863_s0, 4  ;;  %s3813_s18 = int_to_ptr.vmem [resolvable:$true] %s3812_s18 }
  0x2b   :  { %144 = vadd.xlane.f32.xlu1 %v143_v43  ;;  %141 = vadd.xlane.f32.xlu0 %v140_v44  ;;  %v236_v43 = vsel %vm79_vm0, %v67_v41, 0.0  ;;  %v239_v44 = vsel %vm79_vm0, %v68_v42, 0.0  ;;  %s3832_s19 = scalar_lea.vmem %s3813_s18, 64  ;;  %p3837_p1 = scmp.lt.s32.totalorder %s3813_s18, %s3813_s18 }
  0x2c   :  { %p3833_p0 = scmp.ne.s32.totalorder %s3813_s18, %s3832_s19  ;;  %p3838_p2 = scmp.lt.s32.totalorder %s3832_s19, %s3832_s19 }
  0x2e   :  { %p3839_p3 = por %p3838_p2, %p3837_p1 }
  0x2f   :  { %150 = vadd.xlane.f32.xlu1 %v149_v47  ;;  %147 = vadd.xlane.f32.xlu0 %v146_v48  ;;  %v242_v47 = vsel %vm79_vm0, %v69_v45, 0.0  ;;  %v245_v48 = vsel %vm79_vm0, %v70_v46, 0.0 }
  0x30   :  { %p3840_p4 = pnand %p3839_p3, %p3833_p0 }
  0x33   :  { %156 = vadd.xlane.f32.xlu1 %v155_v51  ;;  %153 = vadd.xlane.f32.xlu0 %v152_v52  ;;  %v248_v51 = vsel %vm79_vm0, %v71_v49, 0.0  ;;  %v251_v52 = vsel %vm79_vm0, %v72_v50, 0.0 }
  0x37   :  { %162 = vadd.xlane.f32.xlu1 %v161_v55  ;;  %159 = vadd.xlane.f32.xlu0 %v158_v56  ;;  %v254_v55 = vsel %vm79_vm0, %v73_v53, 0.0  ;;  %v257_v56 = vsel %vm79_vm0, %v74_v54, 0.0 }
  0x3b   :  { %168 = vadd.xlane.f32.xlu1 %v167_v59  ;;  %165 = vadd.xlane.f32.xlu0 %v164_v60  ;;  %v260_v59 = vsel %vm79_vm0, %v75_v57, 0.0  ;;  %v263_v60 = vsel %vm79_vm0, %v76_v58, 0.0 }
  0x3f   :  { %174 = vadd.xlane.f32.xlu1 %v173_v63  ;;  %171 = vadd.xlane.f32.xlu0 %v170_v0  ;;  %v266_v63 = vsel %vm79_vm0, %v77_v61, 0.0  ;;  %v269_v0 = vsel %vm79_vm0, %v78_v62, 0.0  ;;  %vm3756_vm0 = vcmask 1041409  }
  0x43   :  { %180 = vadd.xlane.f32.xlu1 %v179_v3  ;;  %177 = vadd.xlane.f32.xlu0 %v176_v4  ;;  %v5270_v3 = vlaneseq  ;;  %v3858_v4 = vmov 842150450  }
  0x44   :  { %v344_v5 = vunpack.c.l.s4 %v3858_v4 }
  0x47   :  { %186 = vadd.xlane.f32.xlu1 %v185_v7  ;;  %183 = vadd.xlane.f32.xlu0 %v182_v8  ;;  %v351_v7 = vunpack.c.l.s4 %v3859_v6  ;;  %v3860_v8 = vmov 1987475062  }
  0x48   :  { %v358_v9 = vunpack.c.l.s4 %v3860_v8 }
  0x49   :  { %v352_v13 = vunpack.c.0.s8 %v351_v7 }
  0x4a   :  { %v359_v14 = vunpack.c.0.s8 %v358_v9 }
  0x4b   :  { %192 = vadd.xlane.f32.xlu1 %v191_v11  ;;  %189 = vadd.xlane.f32.xlu0 %v188_v12  ;;  %v4131_v11 = vshrl.u32 %v5270_v3, 7  ;;  %v345_v12 = vunpack.c.0.s8 %v344_v5 }
  0x4d   :  { %v4134_v17 = vsub.s32 %v338_v10, %v4131_v11  ;;  %v4137_v18 = vsub.s32 %v345_v12, %v4131_v11 }
  0x4f   :  { %198 = vadd.xlane.f32.xlu1 %v197_v15  ;;  %195 = vadd.xlane.f32.xlu0 %v194_v16  ;;  %v3861_v15 = vmov 1983009808  }
  0x50   :  { %v2131_v16 = vunpack.c.l.s4 %v3861_v15 }
  0x52   :  { %v2132_v21 = vunpack.c.0.s8 %v2131_v16 }
  0x53   :  { %204 = vadd.xlane.f32.xlu1 %v203_v19  ;;  %201 = vadd.xlane.f32.xlu0 %v200_v20  ;;  %v4140_v19 = vsub.s32 %v352_v13, %v4131_v11  ;;  %v4143_v20 = vsub.s32 %v359_v14, %v4131_v11 }
  0x57   :  { %210 = vadd.xlane.f32.xlu1 %v209_v23  ;;  %207 = vadd.xlane.f32.xlu0 %v206_v24 }
  0x5b   :  { %216 = vadd.xlane.f32.xlu1 %v215_v27  ;;  %213 = vadd.xlane.f32.xlu0 %v212_v28 }
  0x5f   :  { %222 = vadd.xlane.f32.xlu1 %v221_v31  ;;  %219 = vadd.xlane.f32.xlu0 %v218_v32  ;;  %v4154_v32 = vsub.s32 %v2132_v21, %v4131_v11 }
  0x63   :  { %228 = vadd.xlane.f32.xlu1 %v227_v35  ;;  %225 = vadd.xlane.f32.xlu0 %v224_v36 }
  0x67   :  { %231 = vadd.xlane.f32.xlu0 %v230_v39  ;;  %234 = vadd.xlane.f32.xlu1 %v233_v40 }
  0x6b   :  { %237 = vadd.xlane.f32.xlu0 %v236_v43  ;;  %240 = vadd.xlane.f32.xlu1 %v239_v44 }
  0x6f   :  { %243 = vadd.xlane.f32.xlu0 %v242_v47  ;;  %246 = vadd.xlane.f32.xlu1 %v245_v48 }
  0x73   :  { %249 = vadd.xlane.f32.xlu0 %v248_v51  ;;  %252 = vadd.xlane.f32.xlu1 %v251_v52 }
  0x77   :  { %255 = vadd.xlane.f32.xlu0 %v254_v55  ;;  %258 = vadd.xlane.f32.xlu1 %v257_v56 }
  0x7b   :  { %261 = vadd.xlane.f32.xlu0 %v260_v59  ;;  %264 = vadd.xlane.f32.xlu1 %v263_v60 }
  0x7f   :  { %267 = vadd.xlane.f32.xlu0 %v266_v63  ;;  %270 = vadd.xlane.f32.xlu1 %v269_v0 }
  0x90   :  { %v88_v22 = vpop.xlane.xlu1 %87  ;;  %v82_v23 = vpop.xlane.xlu0 %81 }
  0x91   :  { %v398_v24 = vrot.slane %v88_v22, %v4134_v17  ;;  %v405_v25 = vrot.slane %v88_v22, %v4137_v18  ;;  %v412_v26 = vrot.slane %v88_v22, %v4140_v19  ;;  %v419_v27 = vrot.slane %v88_v22, %v4143_v20 }
  0x92   :  { %v342_v28 = vrot.slane %v82_v23, %v4134_v17  ;;  %v349_v29 = vrot.slane %v82_v23, %v4137_v18  ;;  %v356_v30 = vrot.slane %v82_v23, %v4140_v19  ;;  %v363_v31 = vrot.slane %v82_v23, %v4143_v20 }
  0x93   :  { %v2162_v37 = vcombine.low %v398_v24, %v405_v25  ;;  %v2163_v38 = vcombine.low %v412_v26, %v419_v27 }
  0x94   :  { %v91_v33 = vpop.xlane.xlu1 %90  ;;  %v85_v34 = vpop.xlane.xlu0 %84  ;;  %v2128_v35 = vcombine.low %v342_v28, %v349_v29  ;;  %v2129_v36 = vcombine.low %v356_v30, %v363_v31 }
  0x95   :  { %v370_v39 = vrot.slane %v85_v34, %v4134_v17  ;;  %v377_v40 = vrot.slane %v85_v34, %v4137_v18  ;;  %v384_v41 = vrot.slane %v85_v34, %v4140_v19  ;;  %v391_v42 = vrot.slane %v85_v34, %v4143_v20 }
  0x96   :  { %v426_v43 = vrot.slane %v91_v33, %v4134_v17  ;;  %v433_v44 = vrot.slane %v91_v33, %v4137_v18  ;;  %v2136_v45 = vrot.slane %v2128_v35, %v4154_v32  ;;  %v2143_v46 = vrot.slane %v2129_v36, %v4154_v32 }
  0x97   :  { %v440_v47 = vrot.slane %v91_v33, %v4140_v19  ;;  %v447_v48 = vrot.slane %v91_v33, %v4143_v20  ;;  %v2145_v51 = vcombine.low %v370_v39, %v377_v40  ;;  %v2146_v52 = vcombine.low %v384_v41, %v391_v42 }
  0x98   :  { %v97_v49 = vpop.xlane.xlu1 %96  ;;  %v94_v50 = vpop.xlane.xlu0 %93  ;;  %v2170_v53 = vrot.slane %v2162_v37, %v4154_v32  ;;  %v2144_v54 = vcombine.low %v2136_v45, %v2143_v46  ;;  %v2177_v57 = vrot.slane %v2163_v38, %v4154_v32  ;;  %v2179_v62 = vcombine.low %v426_v43, %v433_v44 }
  0x99   :  { %v2153_v55 = vrot.slane %v2145_v51, %v4154_v32  ;;  %v2160_v56 = vrot.slane %v2146_v52, %v4154_v32  ;;  %v454_v58 = vrot.slane %v94_v50, %v4134_v17  ;;  %v461_v59 = vrot.slane %v94_v50, %v4137_v18 }
  0x9a   :  { %v2180_v63 = vcombine.low %v440_v47, %v447_v48  ;;  %3217 = vperm.xlu0 %3828, %v2144_v54   ;;  %v482_v0 = vrot.slane %v97_v49, %v4134_v17  ;;  %v468_v1 = vrot.slane %v94_v50, %v4140_v19  ;;  %v475_v2 = vrot.slane %v94_v50, %v4143_v20 }
  0x9b   :  { %v489_v4 = vrot.slane %v97_v49, %v4137_v18  ;;  %v496_v5 = vrot.slane %v97_v49, %v4140_v19  ;;  %v503_v6 = vrot.slane %v97_v49, %v4143_v20  ;;  %v2161_v7 = vcombine.low %v2153_v55, %v2160_v56 }
  0x9c   :  { %v4172_v60 = vpop.xlane.xlu1 %102  ;;  %v100_v61 = vpop.xlane.xlu0 %99  ;;  %v2178_v10 = vcombine.low %v2170_v53, %v2177_v57  ;;  %v2187_v12 = vrot.slane %v2179_v62, %v4154_v32  ;;  %v2194_v13 = vrot.slane %v2180_v63, %v4154_v32  ;;  %v2196_v14 = vcombine.low %v454_v58, %v461_v59 }
  0x9d   :  { %3220 = vperm.xlu1 %3829, %v2161_v7   ;;  %v538_v23 = vrot.slane %v4172_v60, %v4134_v17  ;;  %v545_v24 = vrot.slane %v4172_v60, %v4137_v18  ;;  %v552_v25 = vrot.slane %v4172_v60, %v4140_v19  ;;  %v2197_v26 = vcombine.low %v468_v1, %v475_v2 }
  0x9e   :  { %v510_v27 = vrot.slane %v100_v61, %v4134_v17  ;;  %v517_v28 = vrot.slane %v100_v61, %v4137_v18  ;;  %v559_v31 = vrot.slane %v4172_v60, %v4143_v20  ;;  %v524_v33 = vrot.slane %v100_v61, %v4140_v19 }
  0x9f   :  { %v531_v34 = vrot.slane %v100_v61, %v4143_v20  ;;  %v2195_v37 = vcombine.low %v2187_v12, %v2194_v13  ;;  %v2204_v42 = vrot.slane %v2196_v14, %v4154_v32  ;;  %v2211_v43 = vrot.slane %v2197_v26, %v4154_v32 }
  0xa0   :  { %v109_v8 = vpop.xlane.xlu1 %108  ;;  %v4180_v9 = vpop.xlane.xlu0 %105  ;;  %v2213_v44 = vcombine.low %v482_v0, %v489_v4  ;;  %v2214_v45 = vcombine.low %v496_v5, %v503_v6  ;;  %v2230_v49 = vcombine.low %v510_v27, %v517_v28  ;;  %v2248_v26 = vcombine.low %v552_v25, %v559_v31 }
  0xa1   :  { %v594_v15 = vrot.slane %v109_v8, %v4134_v17  ;;  %v601_v16 = vrot.slane %v109_v8, %v4137_v18  ;;  %v608_v21 = vrot.slane %v109_v8, %v4140_v19  ;;  %v615_v22 = vrot.slane %v109_v8, %v4143_v20  ;;  %3223 = vperm.xlu1 %3829, %v2178_v10  }
  0xa2   :  { %v566_v50 = vrot.slane %v4180_v9, %v4134_v17  ;;  %v573_v51 = vrot.slane %v4180_v9, %v4137_v18  ;;  %v2231_v55 = vcombine.low %v524_v33, %v531_v34  ;;  %v580_v60 = vrot.slane %v4180_v9, %v4140_v19 }
  0xa3   :  { %v2281_v29 = vcombine.low %v594_v15, %v601_v16  ;;  %v2282_v30 = vcombine.low %v608_v21, %v615_v22  ;;  %v2212_v61 = vcombine.low %v2204_v42, %v2211_v43  ;;  %v2221_v62 = vrot.slane %v2213_v44, %v4154_v32 }
  0xa4   :  { %v115_v35 = vpop.xlane.xlu1 %114  ;;  %v4200_v36 = vpop.xlane.xlu0 %111  ;;  %v2228_v63 = vrot.slane %v2214_v45, %v4154_v32  ;;  %v587_v5 = vrot.slane %v4180_v9, %v4143_v20  ;;  %v2238_v8 = vrot.slane %v2230_v49, %v4154_v32  ;;  %v2245_v10 = vrot.slane %v2231_v55, %v4154_v32 }
  0xa5   :  { %v650_v38 = vrot.slane %v115_v35, %v4134_v17  ;;  %v657_v39 = vrot.slane %v115_v35, %v4137_v18  ;;  %v664_v40 = vrot.slane %v115_v35, %v4140_v19  ;;  %v671_v41 = vrot.slane %v115_v35, %v4143_v20  ;;  %3226 = vperm.xlu1 %3829, %v2195_v37  }
  0xa6   :  { %v2289_v46 = vrot.slane %v2281_v29, %v4154_v32  ;;  %v2296_v47 = vrot.slane %v2282_v30, %v4154_v32  ;;  %v622_v9 = vrot.slane %v4200_v36, %v4134_v17  ;;  %v629_v21 = vrot.slane %v4200_v36, %v4137_v18 }
  0xa7   :  { %v2315_v48 = vcombine.low %v650_v38, %v657_v39  ;;  %v2316_v54 = vcombine.low %v664_v40, %v671_v41  ;;  %v2247_v22 = vcombine.low %v538_v23, %v545_v24  ;;  %v2229_v27 = vcombine.low %v2221_v62, %v2228_v63 }
  0xa8   :  { %v121_v52 = vpop.xlane.xlu1 %120  ;;  %v4214_v53 = vpop.xlane.xlu0 %117  ;;  %v2297_v0 = vcombine.low %v2289_v46, %v2296_v47  ;;  %v636_v33 = vrot.slane %v4200_v36, %v4140_v19  ;;  %v643_v34 = vrot.slane %v4200_v36, %v4143_v20  ;;  %v2262_v41 = vrot.slane %v2248_v26, %v4154_v32 }
  0xa9   :  { %v706_v56 = vrot.slane %v121_v52, %v4134_v17  ;;  %v713_v57 = vrot.slane %v121_v52, %v4137_v18  ;;  %v720_v58 = vrot.slane %v121_v52, %v4140_v19  ;;  %v727_v59 = vrot.slane %v121_v52, %v4143_v20  ;;  %3229 = vperm.xlu1 %3829, %v2212_v61  }
  0xaa   :  { %v2323_v1 = vrot.slane %v2315_v48, %v4154_v32  ;;  %v2330_v2 = vrot.slane %v2316_v54, %v4154_v32  ;;  %3244 = vperm.xlu0 %3828, %v2297_v0   ;;  %v2255_v40 = vrot.slane %v2247_v22, %v4154_v32  ;;  %v2264_v36 = vcombine.low %v566_v50, %v573_v51 }
  0xab   :  { %v2349_v4 = vcombine.low %v706_v56, %v713_v57  ;;  %v2350_v12 = vcombine.low %v720_v58, %v727_v59  ;;  %v2265_v42 = vcombine.low %v580_v60, %v587_v5  ;;  %v2246_v43 = vcombine.low %v2238_v8, %v2245_v10 }
  0xac   :  { %v127_v6 = vpop.xlane.xlu1 %126  ;;  %v4228_v7 = vpop.xlane.xlu0 %123  ;;  %v2331_v28 = vcombine.low %v2323_v1, %v2330_v2  ;;  %v678_v54 = vrot.slane %v4214_v53, %v4134_v17  ;;  %v685_v55 = vrot.slane %v4214_v53, %v4137_v18  ;;  %v692_v50 = vrot.slane %v4214_v53, %v4140_v19 }
  0xad   :  { %v762_v13 = vrot.slane %v127_v6, %v4134_v17  ;;  %v769_v14 = vrot.slane %v127_v6, %v4137_v18  ;;  %v776_v15 = vrot.slane %v127_v6, %v4140_v19  ;;  %v783_v16 = vrot.slane %v127_v6, %v4143_v20  ;;  %3232 = vperm.xlu1 %3829, %v2229_v27  }
  0xae   :  { %v2357_v29 = vrot.slane %v2349_v4, %v4154_v32  ;;  %v2364_v30 = vrot.slane %v2350_v12, %v4154_v32  ;;  %3250 = vperm.xlu0 %3828, %v2331_v28   ;;  %v699_v51 = vrot.slane %v4214_v53, %v4143_v20  ;;  %v2263_v56 = vcombine.low %v2255_v40, %v2262_v41 }
  0xaf   :  { %v2383_v38 = vcombine.low %v762_v13, %v769_v14  ;;  %v2384_v39 = vcombine.low %v776_v15, %v783_v16  ;;  %v2272_v57 = vrot.slane %v2264_v36, %v4154_v32  ;;  %v2279_v58 = vrot.slane %v2265_v42, %v4154_v32 }
  0xb0   :  { %v133_v35 = vpop.xlane.xlu1 %132  ;;  %v4246_v37 = vpop.xlane.xlu0 %129  ;;  %v2365_v44 = vcombine.low %v2357_v29, %v2364_v30  ;;  %v2298_v59 = vcombine.low %v622_v9, %v629_v21  ;;  %v2299_v63 = vcombine.low %v636_v33, %v643_v34  ;;  %v734_v53 = vrot.slane %v4228_v7, %v4134_v17 }
  0xb1   :  { %v818_v23 = vrot.slane %v133_v35, %v4134_v17  ;;  %v825_v24 = vrot.slane %v133_v35, %v4137_v18  ;;  %v832_v25 = vrot.slane %v133_v35, %v4140_v19  ;;  %v839_v31 = vrot.slane %v133_v35, %v4143_v20  ;;  %3235 = vperm.xlu1 %3829, %v2246_v43  }
  0xb2   :  { %v2391_v45 = vrot.slane %v2383_v38, %v4154_v32  ;;  %v2398_v46 = vrot.slane %v2384_v39, %v4154_v32  ;;  %3256 = vperm.xlu0 %3828, %v2365_v44   ;;  %v741_v2 = vrot.slane %v4228_v7, %v4137_v18  ;;  %v748_v4 = vrot.slane %v4228_v7, %v4140_v19 }
  0xb3   :  { %v2417_v49 = vcombine.low %v818_v23, %v825_v24  ;;  %v2418_v52 = vcombine.low %v832_v25, %v839_v31  ;;  %v755_v5 = vrot.slane %v4228_v7, %v4143_v20  ;;  %v2280_v6 = vcombine.low %v2272_v57, %v2279_v58 }
  0xb4   :  { %v4256_v47 = vpop.xlane.xlu1 %138  ;;  %v4258_v48 = vpop.xlane.xlu0 %135  ;;  %v2399_v60 = vcombine.low %v2391_v45, %v2398_v46  ;;  %v2306_v8 = vrot.slane %v2298_v59, %v4154_v32  ;;  %v2313_v12 = vrot.slane %v2299_v63, %v4154_v32  ;;  %v2332_v13 = vcombine.low %v678_v54, %v685_v55 }
  0xb5   :  { %v2425_v61 = vrot.slane %v2417_v49, %v4154_v32  ;;  %v2432_v62 = vrot.slane %v2418_v52, %v4154_v32  ;;  %3238 = vperm.xlu1 %3829, %v2263_v56   ;;  %v2333_v14 = vcombine.low %v692_v50, %v699_v51  ;;  %v790_v9 = vrot.slane %v4246_v37, %v4134_v17 }
  0xb6   :  { %3262 = vperm.xlu0 %3828, %v2399_v60   ;;  %v797_v7 = vrot.slane %v4246_v37, %v4137_v18  ;;  %v804_v21 = vrot.slane %v4246_v37, %v4140_v19  ;;  %v811_v22 = vrot.slane %v4246_v37, %v4143_v20  ;;  %v2366_v26 = vcombine.low %v734_v53, %v741_v2 }
  0xb7   :  { %v2433_v10 = vcombine.low %v2425_v61, %v2432_v62  ;;  %v2314_v27 = vcombine.low %v2306_v8, %v2313_v12  ;;  %v2340_v28 = vrot.slane %v2332_v13, %v4154_v32  ;;  %v2347_v29 = vrot.slane %v2333_v14, %v4154_v32 }
  0xb8   :  { %v4272_v0 = vpop.xlane.xlu1 %144  ;;  %v4274_v1 = vpop.xlane.xlu0 %141  ;;  %v2367_v30 = vcombine.low %v748_v4, %v755_v5  ;;  %v846_v35 = vrot.slane %v4258_v48, %v4134_v17  ;;  %v853_v38 = vrot.slane %v4258_v48, %v4137_v18  ;;  %v860_v37 = vrot.slane %v4258_v48, %v4140_v19 }
  0xb9   :  { %3241 = vperm.xlu1 %3829, %v2280_v6   ;;  %v867_v39 = vrot.slane %v4258_v48, %v4143_v20  ;;  %v2374_v23 = vrot.slane %v2366_v26, %v4154_v32  ;;  %v2348_v24 = vcombine.low %v2340_v28, %v2347_v29  ;;  %v2400_v31 = vcombine.low %v790_v9, %v797_v7 }
  0xba   :  { %3268 = vperm.xlu0 %3828, %v2433_v10   ;;  %v2381_v25 = vrot.slane %v2367_v30, %v4154_v32  ;;  %v2401_v40 = vcombine.low %v804_v21, %v811_v22  ;;  %v2434_v42 = vcombine.low %v846_v35, %v853_v38  ;;  %v874_v57 = vrot.slane %v4256_v47, %v4134_v17 }
  0xbb   :  { %v2408_v44 = vrot.slane %v2400_v31, %v4154_v32  ;;  %v2435_v46 = vcombine.low %v860_v37, %v867_v39  ;;  %v881_v6 = vrot.slane %v4256_v47, %v4137_v18  ;;  %v888_v8 = vrot.slane %v4256_v47, %v4140_v19 }
  0xbc   :  { %v4286_v15 = vpop.xlane.xlu1 %150  ;;  %v4288_v16 = vpop.xlane.xlu0 %147  ;;  %v2382_v43 = vcombine.low %v2374_v23, %v2381_v25  ;;  %v2415_v45 = vrot.slane %v2401_v40, %v4154_v32  ;;  %v2442_v54 = vrot.slane %v2434_v42, %v4154_v32  ;;  %v902_v13 = vrot.slane %v4274_v1, %v4134_v17 }
  0xbd   :  { %3247 = vperm.xlu1 %3829, %v2314_v27   ;;  %v2449_v55 = vrot.slane %v2435_v46, %v4154_v32  ;;  %v909_v14 = vrot.slane %v4274_v1, %v4137_v18  ;;  %v895_v26 = vrot.slane %v4256_v47, %v4143_v20  ;;  %v930_v27 = vrot.slane %v4272_v0, %v4134_v17 }
  0xbe   :  { %v2416_v52 = vcombine.low %v2408_v44, %v2415_v45  ;;  %v916_v28 = vrot.slane %v4274_v1, %v4140_v19  ;;  %v923_v29 = vrot.slane %v4274_v1, %v4143_v20  ;;  %v958_v30 = vrot.slane %v4288_v16, %v4134_v17 }
  0xbf   :  { %v2450_v56 = vcombine.low %v2442_v54, %v2449_v55  ;;  %v965_v35 = vrot.slane %v4288_v16, %v4137_v18  ;;  %v972_v38 = vrot.slane %v4288_v16, %v4140_v19  ;;  %v979_v37 = vrot.slane %v4288_v16, %v4143_v20 }
  0xc0   :  { %v4300_v33 = vpop.xlane.xlu1 %156  ;;  %v4302_v34 = vpop.xlane.xlu0 %153  ;;  %v937_v25 = vrot.slane %v4272_v0, %v4137_v18  ;;  %v944_v31 = vrot.slane %v4272_v0, %v4140_v19  ;;  %v951_v40 = vrot.slane %v4272_v0, %v4143_v20  ;;  %v4378_v42 = vcombine.low %v902_v13, %v909_v14 }
  0xc1   :  { %3253 = vperm.xlu1 %3829, %v2348_v24   ;;  %v4384_v44 = vcombine.low %v916_v28, %v923_v29  ;;  %v4394_v55 = vcombine.low %v958_v30, %v965_v35  ;;  %v4437_v30 = vcombine.low %v874_v57, %v881_v6  ;;  %v4439_v35 = vcombine.low %v888_v8, %v895_v26 }
  0xc4   :  { %v4314_v41 = vpop.xlane.xlu1 %162  ;;  %v4316_v36 = vpop.xlane.xlu0 %159 }
  0xc5   :  { %3259 = vperm.xlu1 %3829, %v2382_v43   ;;  %v1098_v13 = vrot.slane %v4314_v41, %v4134_v17  ;;  %v1112_v14 = vrot.slane %v4314_v41, %v4140_v19  ;;  %v1084_v28 = vrot.slane %v4316_v36, %v4140_v19  ;;  %v1091_v29 = vrot.slane %v4316_v36, %v4143_v20 }
  0xc7   :  { %v4475_v54 = vcombine.low %v1084_v28, %v1091_v29 }
  0xc8   :  { %v4320_v48 = vpop.xlane.xlu1 %168  ;;  %v4322_v49 = vpop.xlane.xlu0 %165 }
  0xc9   :  { %3265 = vperm.xlu1 %3829, %v2416_v52   ;;  %v1126_v47 = vrot.slane %v4322_v49, %v4134_v17  ;;  %v1133_v57 = vrot.slane %v4322_v49, %v4137_v18  ;;  %v1140_v6 = vrot.slane %v4322_v49, %v4140_v19  ;;  %v1147_v8 = vrot.slane %v4322_v49, %v4143_v20 }
  0xca   :  { %5275 = vst [vmem:[#allocation10_spill] sm:$0xff] %v4475_v54 }
  0xcc   :  { %v4326_v50 = vpop.xlane.xlu1 %174  ;;  %v4328_v51 = vpop.xlane.xlu0 %171 }
  0xcd   :  { %3271 = vperm.xlu1 %3829, %v2450_v56   ;;  %v4396_v56 = vcombine.low %v972_v38, %v979_v37  ;;  %v1161_v38 = vrot.slane %v4320_v48, %v4137_v18  ;;  %v1168_v37 = vrot.slane %v4320_v48, %v4140_v19  ;;  %v1210_v49 = vrot.slane %v4326_v50, %v4134_v17 }
  0xce   :  { %v1196_v28 = vrot.slane %v4328_v51, %v4140_v19 }
  0xd0   :  { %v181_v58 = vpop.xlane.xlu1 %180  ;;  %v178_v59 = vpop.xlane.xlu0 %177 }
  0xd1   :  { %v1266_v60 = vrot.slane %v181_v58, %v4134_v17  ;;  %v1273_v61 = vrot.slane %v181_v58, %v4137_v18  ;;  %v1280_v62 = vrot.slane %v181_v58, %v4140_v19  ;;  %v1287_v63 = vrot.slane %v181_v58, %v4143_v20 }
  0xd2   :  { %v1238_v53 = vrot.slane %v178_v59, %v4134_v17  ;;  %v1245_v2 = vrot.slane %v178_v59, %v4137_v18  ;;  %v1252_v4 = vrot.slane %v178_v59, %v4140_v19  ;;  %v1259_v5 = vrot.slane %v178_v59, %v4143_v20 }
  0xd3   :  { %v2689_v10 = vcombine.low %v1266_v60, %v1273_v61  ;;  %v2690_v12 = vcombine.low %v1280_v62, %v1287_v63  ;;  %v1042_v58 = vrot.slane %v4300_v33, %v4134_v17  ;;  %v1049_v59 = vrot.slane %v4300_v33, %v4137_v18 }
  0xd4   :  { %v2672_v9 = vcombine.low %v1238_v53, %v1245_v2  ;;  %v2673_v7 = vcombine.low %v1252_v4, %v1259_v5  ;;  %v4348_v21 = vpop.xlane.xlu1 %186  ;;  %v4350_v22 = vpop.xlane.xlu0 %183  ;;  %v1056_v60 = vrot.slane %v4300_v33, %v4140_v19  ;;  %v1063_v63 = vrot.slane %v4300_v33, %v4143_v20 }
  0xd5   :  { %v2697_v39 = vrot.slane %v2689_v10, %v4154_v32  ;;  %v2704_v23 = vrot.slane %v2690_v12, %v4154_v32  ;;  %v1014_v53 = vrot.slane %v4302_v34, %v4134_v17  ;;  %v1021_v2 = vrot.slane %v4302_v34, %v4137_v18 }
  0xd6   :  { %v2680_v24 = vrot.slane %v2672_v9, %v4154_v32  ;;  %v2687_v1 = vrot.slane %v2673_v7, %v4154_v32  ;;  %v1028_v4 = vrot.slane %v4302_v34, %v4140_v19  ;;  %v1035_v12 = vrot.slane %v4302_v34, %v4143_v20 }
  0xd7   :  { %v2705_v61 = vcombine.low %v2697_v39, %v2704_v23  ;;  %v1105_v33 = vrot.slane %v4314_v41, %v4137_v18  ;;  %v1119_v9 = vrot.slane %v4314_v41, %v4143_v20  ;;  %v1070_v7 = vrot.slane %v4316_v36, %v4134_v17 }
  0xd8   :  { %v4380_v16 = vpop.xlane.xlu1 %192  ;;  %v4382_v43 = vpop.xlane.xlu0 %189  ;;  %v2688_v62 = vcombine.low %v2680_v24, %v2687_v1  ;;  %v1077_v34 = vrot.slane %v4316_v36, %v4137_v18  ;;  %v1154_v41 = vrot.slane %v4320_v48, %v4134_v17  ;;  %v1175_v39 = vrot.slane %v4320_v48, %v4143_v20 }
  0xd9   :  { %3316 = vperm.xlu1 %3829, %v2705_v61   ;;  %v4461_v26 = vcombine.low %v1042_v58, %v1049_v59  ;;  %v4463_v24 = vcombine.low %v1056_v60, %v1063_v63  ;;  %v4465_v48 = vcombine.low %v1014_v53, %v1021_v2  ;;  %v4467_v1 = vcombine.low %v1028_v4, %v1035_v12 }
  0xda   :  { %3313 = vperm.xlu0 %3828, %v2688_v62   ;;  %v4469_v61 = vcombine.low %v1098_v13, %v1105_v33  ;;  %v4471_v62 = vcombine.low %v1112_v14, %v1119_v9  ;;  %v4473_v52 = vcombine.low %v1070_v7, %v1077_v34  ;;  %v4477_v45 = vcombine.low %v1154_v41, %v1161_v38 }
  0xdb   :  { %5271 = vst [vmem:[#allocation6_spill] sm:$0xff] %v4463_v24  ;;  %v4479_v46 = vcombine.low %v1168_v37, %v1175_v39  ;;  %v1217_v58 = vrot.slane %v4326_v50, %v4137_v18  ;;  %v4489_v63 = vcombine.low %v1126_v47, %v1133_v57  ;;  %v4491_v53 = vcombine.low %v1140_v6, %v1147_v8 }
  0xdc   :  { %v4412_v5 = vpop.xlane.xlu1 %198  ;;  %v4414_v10 = vpop.xlane.xlu0 %195  ;;  %5272 = vst [vmem:[#allocation7_spill] sm:$0xff] %v4469_v61  ;;  %5273 = vst [vmem:[#allocation8_spill] sm:$0xff] %v4471_v62  ;;  %v2459_v2 = vrot.slane %v4437_v30, %v4154_v32  ;;  %v2466_v4 = vrot.slane %v4439_v35, %v4154_v32  ;;  %v1224_v12 = vrot.slane %v4326_v50, %v4140_v19 }
  0xdd   :  { %5274 = vst [vmem:[#allocation9_spill] sm:$0xff] %v4473_v52  ;;  %5276 = vst [vmem:[#allocation11_spill] sm:$0xff] %v4477_v45  ;;  %v1294_v13 = vrot.slane %v4350_v22, %v4134_v17  ;;  %v1301_v33 = vrot.slane %v4350_v22, %v4137_v18  ;;  %v2476_v14 = vrot.slane %v4378_v42, %v4154_v32 }
  0xde   :  { %5277 = vst [vmem:[#allocation12_spill] sm:$0xff] %v4479_v46  ;;  %5278 = vst [vmem:[#allocation13_spill] sm:$0xff] %v4489_v63  ;;  %v1231_v9 = vrot.slane %v4326_v50, %v4143_v20  ;;  %v1182_v7 = vrot.slane %v4328_v51, %v4134_v17  ;;  %v1189_v34 = vrot.slane %v4328_v51, %v4137_v18 }
  0xdf   :  { %5279 = vst [vmem:[#allocation14_spill] sm:$0xff] %v4491_v53  ;;  %v4513_v29 = vcombine.low %v1210_v49, %v1217_v58  ;;  %v1203_v30 = vrot.slane %v4328_v51, %v4143_v20  ;;  %v2483_v50 = vrot.slane %v4384_v44, %v4154_v32  ;;  %v4529_v41 = vcombine.low %v930_v27, %v937_v25 }
  0xe0   :  { %v4449_v36 = vpop.xlane.xlu1 %204  ;;  %v4451_v23 = vpop.xlane.xlu0 %201  ;;  %v1322_v38 = vrot.slane %v4348_v21, %v4134_v17  ;;  %v1308_v51 = vrot.slane %v4350_v22, %v4140_v19  ;;  %v1315_v37 = vrot.slane %v4350_v22, %v4143_v20  ;;  %v4543_v44 = vcombine.low %v944_v31, %v951_v40 }
  0xe1   :  { %5280 = vst [vmem:[#allocation15_spill] sm:$0xff] %v4513_v29  ;;  %v1329_v27 = vrot.slane %v4348_v21, %v4137_v18  ;;  %v1336_v25 = vrot.slane %v4348_v21, %v4140_v19  ;;  %v1343_v39 = vrot.slane %v4348_v21, %v4143_v20  ;;  %v4551_v47 = vcombine.low %v1294_v13, %v1301_v33 }
  0xe2   :  { %v1378_v22 = vrot.slane %v4380_v16, %v4134_v17  ;;  %v1385_v57 = vrot.slane %v4380_v16, %v4137_v18  ;;  %v1392_v0 = vrot.slane %v4380_v16, %v4140_v19  ;;  %v1399_v31 = vrot.slane %v4380_v16, %v4143_v20 }
  0xe3   :  { %v1350_v40 = vrot.slane %v4382_v43, %v4134_v17  ;;  %v1357_v21 = vrot.slane %v4382_v43, %v4137_v18  ;;  %v1364_v6 = vrot.slane %v4382_v43, %v4140_v19  ;;  %v1371_v8 = vrot.slane %v4382_v43, %v4143_v20 }
  0xe4   :  { %v4485_v59 = vpop.xlane.xlu1 %210  ;;  %v4487_v60 = vpop.xlane.xlu0 %207  ;;  %v4573_v13 = vcombine.low %v1224_v12, %v1231_v9  ;;  %v4575_v33 = vcombine.low %v1182_v7, %v1189_v34  ;;  %v4577_v16 = vcombine.low %v1308_v51, %v1315_v37  ;;  %v4579_v3 = vcombine.low %v2459_v2, %v2466_v4 }
  0xe5   :  { %v4581_v29 = vcombine.low %v1196_v28, %v1203_v30  ;;  %v4583_v46 = vcombine.low %v2476_v14, %v2483_v50  ;;  %v4589_v53 = vcombine.low %v1378_v22, %v1385_v57  ;;  %v4591_v12 = vcombine.low %v1322_v38, %v1329_v27 }
  0xe6   :  { %5281 = vst [vmem:[#allocation16_spill] sm:$0xff] %v4573_v13  ;;  %5282 = vst [vmem:[#allocation17_spill] sm:$0xff] %v4575_v33  ;;  %v4593_v9 = vcombine.low %v1336_v25, %v1343_v39  ;;  %v4597_v4 = vcombine.low %v1392_v0, %v1399_v31  ;;  %v4599_v7 = vcombine.low %v1350_v40, %v1357_v21 }
  0xe7   :  { %5283 = vst [vmem:[#allocation18_spill] sm:$0xff] %v4581_v29  ;;  %v4601_v14 = vcombine.low %v1364_v6, %v1371_v8  ;;  %v2714_v30 = vrot.slane %v4551_v47, %v4154_v32  ;;  %v2721_v37 = vrot.slane %v4577_v16, %v4154_v32  ;;  %v1434_v47 = vrot.slane %v4412_v5, %v4134_v17 }
  0xe8   :  { %v4517_v35 = vpop.xlane.xlu1 %216  ;;  %v4519_v42 = vpop.xlane.xlu0 %213  ;;  %v1441_v57 = vrot.slane %v4412_v5, %v4137_v18  ;;  %v1448_v40 = vrot.slane %v4412_v5, %v4140_v19  ;;  %v1455_v21 = vrot.slane %v4412_v5, %v4143_v20  ;;  %v1490_v62 = vrot.slane %v4449_v36, %v4134_v17 }
  0xe9   :  { %v5285_v24 = vrot.slane %v4543_v44, %v4154_v32 }
  0xec   :  { %v4569_v49 = vpop.xlane.xlu1 %222  ;;  %v4571_v58 = vpop.xlane.xlu0 %219 }
  0xf0   :  { %v229_v34 = vpop.xlane.xlu1 %228  ;;  %v226_v28 = vpop.xlane.xlu0 %225 }
  0xf1   :  { %v1714_v50 = vrot.slane %v229_v34, %v4134_v17  ;;  %v1721_v38 = vrot.slane %v229_v34, %v4137_v18  ;;  %v1728_v51 = vrot.slane %v229_v34, %v4140_v19  ;;  %v1735_v27 = vrot.slane %v229_v34, %v4143_v20 }
  0xf2   :  { %v1686_v25 = vrot.slane %v226_v28, %v4134_v17  ;;  %v1693_v39 = vrot.slane %v226_v28, %v4137_v18  ;;  %v1700_v22 = vrot.slane %v226_v28, %v4140_v19  ;;  %v1707_v31 = vrot.slane %v226_v28, %v4143_v20 }
  0xf3   :  { %v2961_v0 = vcombine.low %v1714_v50, %v1721_v38  ;;  %v2962_v6 = vcombine.low %v1728_v51, %v1735_v27 }
  0xf4   :  { %v2944_v8 = vcombine.low %v1686_v25, %v1693_v39  ;;  %v232_v16 = vpop.xlane.xlu0 %231  ;;  %v235_v34 = vpop.xlane.xlu1 %234  ;;  %v2945_v2 = vcombine.low %v1700_v22, %v1707_v31 }
  0xf5   :  { %v1742_v45 = vrot.slane %v232_v16, %v4134_v17  ;;  %v1749_v43 = vrot.slane %v232_v16, %v4137_v18  ;;  %v1756_v13 = vrot.slane %v232_v16, %v4140_v19  ;;  %v1763_v50 = vrot.slane %v232_v16, %v4143_v20 }
  0xf6   :  { %v2969_v28 = vrot.slane %v2961_v0, %v4154_v32  ;;  %v2976_v38 = vrot.slane %v2962_v6, %v4154_v32  ;;  %v2952_v29 = vrot.slane %v2944_v8, %v4154_v32  ;;  %v2959_v51 = vrot.slane %v2945_v2, %v4154_v32 }
  0xf7   :  { %v2978_v5 = vcombine.low %v1742_v45, %v1749_v43  ;;  %v1770_v27 = vrot.slane %v235_v34, %v4134_v17  ;;  %v1777_v25 = vrot.slane %v235_v34, %v4137_v18  ;;  %v2979_v39 = vcombine.low %v1756_v13, %v1763_v50 }
  0xf8   :  { %v2977_v22 = vcombine.low %v2969_v28, %v2976_v38  ;;  %v1784_v31 = vrot.slane %v235_v34, %v4140_v19  ;;  %v1791_v33 = vrot.slane %v235_v34, %v4143_v20  ;;  %v238_v16 = vpop.xlane.xlu0 %237  ;;  %v1406_v0 = vrot.slane %v4414_v10, %v4134_v17 }
  0xf9   :  { %v1413_v6 = vrot.slane %v4414_v10, %v4137_v18  ;;  %v2960_v45 = vcombine.low %v2952_v29, %v2959_v51  ;;  %v2986_v43 = vrot.slane %v2978_v5, %v4154_v32  ;;  %v2993_v2 = vrot.slane %v2979_v39, %v4154_v32 }
  0xfa   :  { %3364 = vperm.xlu1 %3829, %v2977_v22   ;;  %v1798_v13 = vrot.slane %v238_v16, %v4134_v17  ;;  %v1805_v8 = vrot.slane %v238_v16, %v4137_v18  ;;  %v1812_v50 = vrot.slane %v238_v16, %v4140_v19  ;;  %v1420_v34 = vrot.slane %v4414_v10, %v4140_v19  ;;  %v241_v22 = vpop.xlane.xlu1 %240 }
  0xfb   :  { %3361 = vperm.xlu0 %3828, %v2960_v45   ;;  %v2995_v28 = vcombine.low %v1770_v27, %v1777_v25  ;;  %v2996_v38 = vcombine.low %v1784_v31, %v1791_v33  ;;  %v1819_v63 = vrot.slane %v238_v16, %v4143_v20  ;;  %v1427_v29 = vrot.slane %v4414_v10, %v4143_v20 }
  0xfc   :  { %v2994_v5 = vcombine.low %v2986_v43, %v2993_v2  ;;  %v2731_v51 = vrot.slane %v4591_v12, %v4154_v32  ;;  %v2738_v39 = vrot.slane %v4593_v9, %v4154_v32  ;;  %v1497_v27 = vrot.slane %v4449_v36, %v4137_v18 }
  0xfd   :  { %v2722_v33 = vcombine.low %v2714_v30, %v2721_v37  ;;  %v5284_v25 = vlaneseq  ;;  %v4660_v16 = vcombine.low %v1434_v47, %v1441_v57  ;;  %v4662_v10 = vcombine.low %v1448_v40, %v1455_v21 }
  0xfe   :  { %3367 = vperm.xlu1 %3829, %v2994_v5   ;;  %v3012_v12 = vcombine.low %v1798_v13, %v1805_v8  ;;  %v3013_v45 = vcombine.low %v1812_v50, %v1819_v63  ;;  %v4664_v43 = vcombine.low %v1406_v0, %v1413_v6  ;;  %v3003_v9 = vrot.slane %v2995_v28, %v4154_v32  ;;  %v244_v63 = vpop.xlane.xlu0 %243 }
  0xff   :  { %v4658_v31 = vand.u32 127, %v5284_v25  ;;  %3319 = vperm.xlu0 %3828, %v2722_v33   ;;  %v3010_v2 = vrot.slane %v2996_v38, %v4154_v32  ;;  %v2748_v30 = vrot.slane %v4599_v7, %v4154_v32  ;;  %v4670_v37 = vcombine.low %v1420_v34, %v1427_v29 }
 0x100   :  { %v1504_v47 = vrot.slane %v4449_v36, %v4140_v19  ;;  %v1511_v57 = vrot.slane %v4449_v36, %v4143_v20  ;;  %v2739_v40 = vcombine.low %v2731_v51, %v2738_v39  ;;  %v4676_v21 = vcombine.low %v1490_v62, %v1497_v27  ;;  %v4687_v36 = vpop.xlane.xlu1 %246 }
 0x101   :  { %v1462_v0 = vrot.slane %v4451_v23, %v4134_v17  ;;  %v1469_v6 = vrot.slane %v4451_v23, %v4137_v18  ;;  %v1476_v7 = vrot.slane %v4451_v23, %v4140_v19  ;;  %v1483_v13 = vrot.slane %v4451_v23, %v4143_v20 }
 0x102   :  { %3322 = vperm.xlu1 %3829, %v2739_v40   ;;  %v1826_v8 = vrot.slane %v241_v22, %v4134_v17  ;;  %v3020_v62 = vrot.slane %v3012_v12, %v4154_v32  ;;  %v3027_v50 = vrot.slane %v3013_v45, %v4154_v32  ;;  %v1833_v34 = vrot.slane %v241_v22, %v4137_v18 }
 0x103   :  { %3274 = vperm.xlu0 %3828, %v4579_v3   ;;  %v1840_v28 = vrot.slane %v241_v22, %v4140_v19  ;;  %v1847_v38 = vrot.slane %v241_v22, %v4143_v20  ;;  %v3011_v29 = vcombine.low %v3003_v9, %v3010_v2  ;;  %v1546_v23 = vrot.slane %v4485_v59, %v4134_v17 }
 0x104   :  { %v1553_v5 = vrot.slane %v4485_v59, %v4137_v18  ;;  %v1560_v51 = vrot.slane %v4485_v59, %v4140_v19  ;;  %v2755_v39 = vrot.slane %v4601_v14, %v4154_v32  ;;  %v1567_v3 = vrot.slane %v4485_v59, %v4143_v20  ;;  %v4714_v14 = vpop.xlane.xlu0 %249  ;;  %v4722_v52 = vpop.xlane.xlu1 %252 }
 0x105   :  { %v1518_v27 = vrot.slane %v4487_v60, %v4134_v17  ;;  %v1525_v22 = vrot.slane %v4487_v60, %v4137_v18  ;;  %v1854_v33 = vrot.slane %v244_v63, %v4134_v17  ;;  %v1861_v25 = vrot.slane %v244_v63, %v4137_v18 }
 0x106   :  { %v1868_v12 = vrot.slane %v244_v63, %v4140_v19  ;;  %v1875_v45 = vrot.slane %v244_v63, %v4143_v20  ;;  %3277 = vperm.xlu1 %3829, %v4583_v46   ;;  %v3028_v9 = vcombine.low %v3020_v62, %v3027_v50  ;;  %v4716_v59 = vcombine.low %v1504_v47, %v1511_v57 }
 0x107   :  { %v4718_v2 = vcombine.low %v1462_v0, %v1469_v6  ;;  %v3029_v40 = vcombine.low %v1826_v8, %v1833_v34  ;;  %v3030_v61 = vcombine.low %v1840_v28, %v1847_v38  ;;  %3370 = vperm.xlu0 %3828, %v3011_v29   ;;  %v4720_v54 = vcombine.low %v1476_v7, %v1483_v13 }
 0x108   :  { %v5286_v46 = vrot.slane %v4529_v41, %v4154_v32  ;;  %v2765_v47 = vrot.slane %v4589_v53, %v4154_v32  ;;  %v2772_v57 = vrot.slane %v4597_v4, %v4154_v32  ;;  %v4734_v0 = vcombine.low %v1546_v23, %v1553_v5  ;;  %v4756_v28 = vpop.xlane.xlu0 %255 }
 0x109   :  { %v1532_v6 = vrot.slane %v4487_v60, %v4140_v19  ;;  %v1539_v7 = vrot.slane %v4487_v60, %v4143_v20  ;;  %v2756_v13 = vcombine.low %v2748_v30, %v2755_v39  ;;  %v4740_v44 = vcombine.low %v1560_v51, %v1567_v3  ;;  %v4770_v51 = vpop.xlane.xlu1 %258 }
 0x10a   :  { %v2501_v63 = vcombine.low %v5286_v46, %v5285_v24  ;;  %v4742_v8 = vcombine.low %v1518_v27, %v1525_v22  ;;  %v3046_v24 = vcombine.low %v1854_v33, %v1861_v25  ;;  %v3047_v41 = vcombine.low %v1868_v12, %v1875_v45  ;;  %3373 = vperm.xlu1 %3829, %v3028_v9  }
 0x10b   :  { %v1602_v53 = vrot.slane %v4517_v35, %v4134_v17  ;;  %3325 = vperm.xlu0 %3828, %v2756_v13   ;;  %v3037_v4 = vrot.slane %v3029_v40, %v4154_v32  ;;  %v3044_v62 = vrot.slane %v3030_v61, %v4154_v32  ;;  %v2517_v50 = vrot.slane %v4396_v56, %v4154_v32 }
 0x10c   :  { %v1609_v60 = vrot.slane %v4517_v35, %v4137_v18  ;;  %v1616_v30 = vrot.slane %v4517_v35, %v4140_v19  ;;  %v1623_v34 = vrot.slane %v4517_v35, %v4143_v20  ;;  %v2773_v38 = vcombine.low %v2765_v47, %v2772_v57 }
 0x10d   :  { %v4758_v29 = vcombine.low %v1532_v6, %v1539_v7  ;;  %v1574_v61 = vrot.slane %v4519_v42, %v4134_v17  ;;  %v1581_v56 = vrot.slane %v4519_v42, %v4137_v18  ;;  %v2782_v23 = vrot.slane %v4664_v43, %v4154_v32 }
 0x10e   :  { %v1588_v5 = vrot.slane %v4519_v42, %v4140_v19  ;;  %v1882_v35 = vrot.slane %v4687_v36, %v4134_v17  ;;  %3328 = vperm.xlu1 %3829, %v2773_v38   ;;  %v3054_v39 = vrot.slane %v3046_v24, %v4154_v32  ;;  %v3061_v3 = vrot.slane %v3047_v41, %v4154_v32  ;;  %v4811_v24 = vpop.xlane.xlu0 %261 }
 0x10f   :  { %v1889_v27 = vrot.slane %v4687_v36, %v4137_v18  ;;  %v1896_v22 = vrot.slane %v4687_v36, %v4140_v19  ;;  %v1903_v43 = vrot.slane %v4687_v36, %v4143_v20  ;;  %3280 = vperm.xlu0 %3828, %v2501_v63   ;;  %v3045_v33 = vcombine.low %v3037_v4, %v3044_v62 }
 0x110   :  { %v4780_v25 = vcombine.low %v1602_v53, %v1609_v60  ;;  %v4782_v12 = vcombine.low %v1616_v30, %v1623_v34  ;;  %v1595_v45 = vrot.slane %v4519_v42, %v4143_v20  ;;  %v5287_v9 = vrot.slane %v4394_v55, %v4154_v32  ;;  %v4823_v30 = vpop.xlane.xlu1 %264 }
 0x111   :  { %v1910_v46 = vrot.slane %v4714_v14, %v4134_v17  ;;  %v2789_v47 = vrot.slane %v4670_v37, %v4154_v32  ;;  %v5288_v36 = vrot.slane %v4286_v15, %v4137_v18  ;;  %v5289_v63 = vrot.slane %v4286_v15, %v4134_v17 }
 0x112   :  { %v2518_v40 = vcombine.low %v5287_v9, %v2517_v50  ;;  %v5290_v42 = vrot.slane %v4286_v15, %v4143_v20  ;;  %v5291_v55 = vrot.slane %v4286_v15, %v4140_v19  ;;  %v1917_v7 = vrot.slane %v4714_v14, %v4137_v18 }
 0x113   :  { %v2519_v57 = vcombine.low %v5289_v63, %v5288_v36  ;;  %v1924_v37 = vrot.slane %v4714_v14, %v4140_v19  ;;  %v1931_v13 = vrot.slane %v4714_v14, %v4143_v20  ;;  %v3062_v41 = vcombine.low %v3054_v39, %v3061_v3  ;;  %3376 = vperm.xlu0 %3828, %v3045_v33   ;;  %v4844_v33 = vpop.xlane.xlu0 %267 }
 0x114   :  { %v2520_v6 = vcombine.low %v5291_v55, %v5290_v42  ;;  %3283 = vperm.xlu1 %3829, %v2518_v40   ;;  %v4813_v53 = vcombine.low %v1574_v61, %v1581_v56  ;;  %v3063_v4 = vcombine.low %v1882_v35, %v1889_v27  ;;  %v3064_v62 = vcombine.low %v1896_v22, %v1903_v43 }
 0x115   :  { %v4817_v15 = vsub.s32 %v4658_v31, %v4131_v11  ;;  %v4819_v50 = vcombine.low %v1588_v5, %v1595_v45  ;;  %v1658_v60 = vrot.slane %v4569_v49, %v4134_v17  ;;  %v2799_v14 = vrot.slane %v4660_v16, %v4154_v32 }
 0x116   :  { %v2806_v34 = vrot.slane %v4662_v10, %v4154_v32  ;;  %v1665_v38 = vrot.slane %v4569_v49, %v4137_v18  ;;  %v2790_v61 = vcombine.low %v2782_v23, %v2789_v47  ;;  %v2527_v56 = vrot.slane %v2519_v57, %v4154_v32 }
 0x117   :  { %v2534_v5 = vrot.slane %v2520_v6, %v4154_v32  ;;  %v1672_v35 = vrot.slane %v4569_v49, %v4140_v19  ;;  %v1679_v39 = vrot.slane %v4569_v49, %v4143_v20  ;;  %v3080_v3 = vcombine.low %v1910_v46, %v1917_v7 }
 0x118   :  { %v3081_v27 = vcombine.low %v1924_v37, %v1931_v13  ;;  %3379 = vperm.xlu1 %3829, %v3062_v41   ;;  %v1630_v16 = vrot.slane %v4571_v58, %v4134_v17  ;;  %3331 = vperm.xlu0 %3828, %v2790_v61   ;;  %v3414_v10 = vadd.s32 4294967288, %v4658_v31  ;;  %v3071_v23 = vrot.slane %v3063_v4, %v4154_v32 }
 0x119   :  { %v3078_v22 = vrot.slane %v3064_v62, %v4154_v32  ;;  %v1938_v43 = vrot.slane %v4722_v52, %v4134_v17  ;;  %v2807_v45 = vcombine.low %v2799_v14, %v2806_v34  ;;  %v2544_v49 = vrot.slane %v4465_v48, %v4154_v32  ;;  %v4860_v48 = vpop.xlane.xlu1 %270 }
 0x11a   :  { %v2551_v9 = vrot.slane %v4467_v1, %v4154_v32  ;;  %v1945_v40 = vrot.slane %v4722_v52, %v4137_v18  ;;  %v1952_v46 = vrot.slane %v4722_v52, %v4140_v19  ;;  %v1959_v47 = vrot.slane %v4722_v52, %v4143_v20 }
 0x11b   :  { %v2535_v36 = vcombine.low %v2527_v56, %v2534_v5  ;;  %v1637_v63 = vrot.slane %v4571_v58, %v4137_v18  ;;  %v1644_v57 = vrot.slane %v4571_v58, %v4140_v19  ;;  %v3088_v1 = vrot.slane %v3080_v3, %v4154_v32  ;;  %v3218_v56 = vpop.permute.xlu0 %3217 }
 0x11c   :  { %3334 = vperm.xlu1 %3829, %v2807_v45   ;;  %v3095_v42 = vrot.slane %v3081_v27, %v4154_v32  ;;  %v4864_v55 = vcombine.low %v1658_v60, %v1665_v38  ;;  %v1651_v6 = vrot.slane %v4571_v58, %v4143_v20  ;;  %v3079_v52 = vcombine.low %v3071_v23, %v3078_v22 }
 0x11d   :  { %3286 = vperm.xlu0 %3828, %v2535_v36   ;;  %v3421_v7 = vadd.s32 4294967280, %v4658_v31  ;;  %v4869_v37 = vcombine.low %v1672_v35, %v1679_v39  ;;  %v2552_v13 = vcombine.low %v2544_v49, %v2551_v9  ;;  %v2816_v41 = vrot.slane %v4718_v2, %v4154_v32  ;;  %v3221_v3 = vpop.permute.xlu1 %3220  ;;  %v5292_v49 = vld [vmem:[#allocation6_spill] sm:$0xff] }
 0x11e   :  { %v2823_v4 = vrot.slane %v4720_v54, %v4154_v32  ;;  %v3097_v62 = vcombine.low %v1938_v43, %v1945_v40  ;;  %v3098_v14 = vcombine.low %v1952_v46, %v1959_v47  ;;  %v1966_v60 = vrot.slane %v4756_v28, %v4134_v17 }
 0x11f   :  { %v4878_v34 = vsub.s32 %v3414_v10, %v4131_v11  ;;  %v1973_v38 = vrot.slane %v4756_v28, %v4137_v18  ;;  %v1980_v61 = vrot.slane %v4756_v28, %v4140_v19  ;;  %v1987_v2 = vrot.slane %v4756_v28, %v4143_v20 }
 0x120   :  { %3289 = vperm.xlu1 %3829, %v2552_v13   ;;  %v3096_v54 = vcombine.low %v3088_v1, %v3095_v42  ;;  %v1994_v5 = vrot.slane %v4770_v51, %v4134_v17  ;;  %v2001_v35 = vrot.slane %v4770_v51, %v4137_v18  ;;  %v4891_v39 = vsub.s32 %v3421_v7, %v4131_v11  ;;  %v5293_v7 = vld [vmem:[#allocation9_spill] sm:$0xff] }
 0x121   :  { %3382 = vperm.xlu0 %3828, %v3079_v52   ;;  %v2824_v27 = vcombine.low %v2816_v41, %v2823_v4  ;;  %v3428_v10 = vadd.s32 4294967272, %v4658_v31  ;;  %v2833_v28 = vrot.slane %v4676_v21, %v4154_v32  ;;  %v2840_v23 = vrot.slane %v4716_v59, %v4154_v32  ;;  %v3224_v42 = vpop.permute.xlu1 %3223  ;;  %v5294_v41 = vld [vmem:[#allocation10_spill] sm:$0xff] }
 0x122   :  { %v3413_v22 = vrot.slane %v3218_v56, %v4817_v15  ;;  %v3418_v43 = vrot.slane %v3221_v3, %v4878_v34  ;;  %v2561_v45 = vrot.slane %v4461_v26, %v4154_v32  ;;  %v2568_v9 = vrot.slane %v5292_v49, %v4154_v32 }
 0x123   :  { %v3114_v40 = vcombine.low %v1966_v60, %v1973_v38  ;;  %v3115_v46 = vcombine.low %v1980_v61, %v1987_v2  ;;  %v2008_v47 = vrot.slane %v4770_v51, %v4140_v19  ;;  %v2015_v21 = vrot.slane %v4770_v51, %v4143_v20 }
 0x124   :  { %3385 = vperm.xlu1 %3829, %v3096_v54   ;;  %v4908_v59 = vcombine.low %v1630_v16, %v1637_v63  ;;  %v3420_v36 = vsel %vm3419_vm1, %v3418_v43, %v3413_v22  ;;  %v3105_v1 = vrot.slane %v3097_v62, %v4154_v32  ;;  %v3112_v26 = vrot.slane %v3098_v14, %v4154_v32 }
 0x125   :  { %3337 = vperm.xlu0 %3828, %v2824_v27   ;;  %v2841_v52 = vcombine.low %v2833_v28, %v2840_v23  ;;  %v2578_v13 = vrot.slane %v5293_v7, %v4154_v32  ;;  %v2585_v4 = vrot.slane %v5294_v41, %v4154_v32  ;;  %v3425_v51 = vrot.slane %v3224_v42, %v4891_v39  ;;  %v3227_v3 = vpop.permute.xlu1 %3226  ;;  %v5296_v7 = vld [vmem:[#allocation8_spill] sm:$0xff] }
 0x126   :  { %v4919_v16 = vsub.s32 %v3428_v10, %v4131_v11  ;;  %v2569_v63 = vcombine.low %v2561_v45, %v2568_v9  ;;  %v3435_v60 = vadd.s32 4294967264, %v4658_v31  ;;  %v4922_v62 = vcombine.low %v1994_v5, %v2001_v35 }
 0x127   :  { %v4924_v14 = vcombine.low %v2008_v47, %v2015_v21  ;;  %v3122_v38 = vrot.slane %v3114_v40, %v4154_v32  ;;  %v3129_v61 = vrot.slane %v3115_v46, %v4154_v32  ;;  %v2022_v2 = vrot.slane %v4811_v24, %v4134_v17 }
 0x128   :  { %3340 = vperm.xlu1 %3829, %v2841_v52   ;;  %v3427_v56 = vsel %vm3426_vm2, %v3425_v51, %v3420_v36  ;;  %v3113_v54 = vcombine.low %v3105_v1, %v3112_v26  ;;  %v2586_v27 = vcombine.low %v2578_v13, %v2585_v4  ;;  %v3442_v5 = vadd.s32 4294967256, %v4658_v31 }
 0x129   :  { %3292 = vperm.xlu0 %3828, %v2569_v63   ;;  %v2850_v35 = vrot.slane %v4742_v8, %v4154_v32  ;;  %v2857_v10 = vrot.slane %v4758_v29, %v4154_v32  ;;  %v2029_v28 = vrot.slane %v4811_v24, %v4137_v18  ;;  %v2036_v23 = vrot.slane %v4811_v24, %v4140_v19  ;;  %v3230_v47 = vpop.permute.xlu1 %3229 }
 0x12a   :  { %v3432_v22 = vrot.slane %v3227_v3, %v4919_v16  ;;  %v4942_v43 = vsub.s32 %v3435_v60, %v4131_v11  ;;  %v2043_v45 = vrot.slane %v4811_v24, %v4143_v20  ;;  %v2050_v8 = vrot.slane %v4823_v30, %v4134_v17 }
 0x12b   :  { %v2057_v29 = vrot.slane %v4823_v30, %v4137_v18  ;;  %v3130_v49 = vcombine.low %v3122_v38, %v3129_v61  ;;  %v2064_v9 = vrot.slane %v4823_v30, %v4140_v19  ;;  %v2071_v40 = vrot.slane %v4823_v30, %v4143_v20  ;;  %v5295_v30 = vld [vmem:[#allocation7_spill] sm:$0xff] }
 0x12c   :  { %3295 = vperm.xlu1 %3829, %v2586_v27   ;;  %v3434_v46 = vsel %vm3433_vm3, %v3432_v22, %v3427_v56  ;;  %v4956_v24 = vsub.s32 %v3442_v5, %v4131_v11  ;;  %v2858_v21 = vcombine.low %v2850_v35, %v2857_v10  ;;  %v2867_v36 = vrot.slane %v4734_v0, %v4154_v32  ;;  %v4998_v35 = vpop.permute.xlu0 %3244 }
 0x12d   :  { %3388 = vperm.xlu0 %3828, %v3113_v54   ;;  %v2874_v1 = vrot.slane %v4740_v44, %v4154_v32  ;;  %v3439_v26 = vrot.slane %v3230_v47, %v4942_v43  ;;  %v3449_v42 = vadd.s32 4294967248, %v4658_v31  ;;  %v2595_v52 = vrot.slane %v5295_v30, %v4154_v32  ;;  %v3233_v58 = vpop.permute.xlu1 %3232 }
 0x12e   :  { %v2602_v13 = vrot.slane %v5296_v7, %v4154_v32  ;;  %v4974_v0 = vcombine.low %v1644_v57, %v1651_v6  ;;  %v3148_v41 = vcombine.low %v2022_v2, %v2029_v28  ;;  %v3149_v44 = vcombine.low %v2036_v23, %v2043_v45  ;;  %v5297_v6 = vld [vmem:[#allocation13_spill] sm:$0xff]  ;;  %v5298_v2 = vld [vmem:[#allocation14_spill] sm:$0xff] }
 0x12f   :  { %v4976_v4 = vcombine.low %v2050_v8, %v2057_v29  ;;  %v4978_v51 = vcombine.low %v2064_v9, %v2071_v40  ;;  %v3441_v63 = vsel %vm3440_vm4, %v3439_v26, %v3434_v46  ;;  %v3139_v60 = vrot.slane %v4922_v62, %v4154_v32 }
 0x130   :  { %3391 = vperm.xlu1 %3829, %v3130_v49   ;;  %v3146_v38 = vrot.slane %v4924_v14, %v4154_v32  ;;  %v2875_v57 = vcombine.low %v2867_v36, %v2874_v1  ;;  %v2612_v61 = vrot.slane %v5297_v6, %v4154_v32  ;;  %v2619_v56 = vrot.slane %v5298_v2, %v4154_v32 }
 0x131   :  { %3343 = vperm.xlu0 %3828, %v2858_v21   ;;  %v3446_v54 = vrot.slane %v3233_v58, %v4956_v24  ;;  %v4991_v3 = vsub.s32 %v3449_v42, %v4131_v11  ;;  %v2603_v27 = vcombine.low %v2595_v52, %v2602_v13  ;;  %v3456_v62 = vadd.s32 4294967240, %v4658_v31  ;;  %v3236_v8 = vpop.permute.xlu1 %3235  ;;  %v5025_v52 = vpop.permute.xlu0 %3250  ;;  %v5300_v58 = vld [vmem:[#allocation12_spill] sm:$0xff] }
 0x132   :  { %v2078_v14 = vrot.slane %v4844_v33, %v4134_v17  ;;  %v2085_v5 = vrot.slane %v4844_v33, %v4137_v18  ;;  %v3156_v10 = vrot.slane %v3148_v41, %v4154_v32  ;;  %v3163_v28 = vrot.slane %v3149_v44, %v4154_v32 }
 0x133   :  { %v2092_v23 = vrot.slane %v4844_v33, %v4140_v19  ;;  %v3448_v22 = vsel %vm3447_vm5, %v3446_v54, %v3441_v63  ;;  %v3147_v45 = vcombine.low %v3139_v60, %v3146_v38  ;;  %v2620_v29 = vcombine.low %v2612_v61, %v2619_v56  ;;  %v5299_v60 = vld [vmem:[#allocation11_spill] sm:$0xff] }
 0x134   :  { %3346 = vperm.xlu1 %3829, %v2875_v57   ;;  %v3463_v49 = vadd.s32 4294967232, %v4658_v31  ;;  %v2884_v9 = vrot.slane %v4813_v53, %v4154_v32  ;;  %v2891_v40 = vrot.slane %v4819_v50, %v4154_v32  ;;  %v2099_v46 = vrot.slane %v4844_v33, %v4143_v20 }
 0x135   :  { %3298 = vperm.xlu0 %3828, %v2603_v27   ;;  %v2106_v47 = vrot.slane %v4860_v48, %v4134_v17  ;;  %v3453_v21 = vrot.slane %v3236_v8, %v4991_v3  ;;  %v5016_v36 = vsub.s32 %v3456_v62, %v4131_v11  ;;  %v2113_v1 = vrot.slane %v4860_v48, %v4137_v18  ;;  %v3239_v7 = vpop.permute.xlu1 %3238 }
 0x136   :  { %v3470_v26 = vadd.s32 4294967224, %v4658_v31  ;;  %v3484_v53 = vadd.s32 4294967208, %v4658_v31  ;;  %v3164_v50 = vcombine.low %v3156_v10, %v3163_v28  ;;  %v3182_v42 = vcombine.low %v2078_v14, %v2085_v5  ;;  %v5302_v14 = vld [vmem:[#allocation18_spill] sm:$0xff] }
 0x137   :  { %v2120_v33 = vrot.slane %v4860_v48, %v4140_v19  ;;  %v3455_v30 = vsel %vm3454_vm6, %v3453_v21, %v3448_v22  ;;  %v5028_v13 = vsub.s32 %v3463_v49, %v4131_v11  ;;  %v2892_v18 = vcombine.low %v2884_v9, %v2891_v40 }
 0x138   :  { %3301 = vperm.xlu1 %3829, %v2620_v29   ;;  %v2901_v41 = vrot.slane %v4780_v25, %v4154_v32  ;;  %v2908_v44 = vrot.slane %v4782_v12, %v4154_v32  ;;  %v3460_v63 = vrot.slane %v3239_v7, %v5016_v36  ;;  %v3477_v19 = vadd.s32 4294967216, %v4658_v31 }
 0x139   :  { %3394 = vperm.xlu0 %3828, %v3147_v45   ;;  %v2629_v38 = vrot.slane %v5299_v60, %v4154_v32  ;;  %v2636_v57 = vrot.slane %v5300_v58, %v4154_v32  ;;  %v3183_v6 = vcombine.low %v2092_v23, %v2099_v46  ;;  %v2127_v61 = vrot.slane %v4860_v48, %v4143_v20  ;;  %v3242_v27 = vpop.permute.xlu1 %3241  ;;  %v5301_v48 = vld [vmem:[#allocation17_spill] sm:$0xff]  ;;  %v3257_v45 = vpop.permute.xlu0 %3256 }
 0x13a   :  { %v5043_v2 = vsub.s32 %v3470_v26, %v4131_v11  ;;  %v5046_v25 = vsub.s32 %v3484_v53, %v4131_v11  ;;  %v3462_v12 = vsel %vm3461_vm7, %v3460_v63, %v3455_v30  ;;  %v3173_v56 = vrot.slane %v4976_v4, %v4154_v32 }
 0x13b   :  { %v3180_v54 = vrot.slane %v4978_v51, %v4154_v32  ;;  %v2909_v20 = vcombine.low %v2901_v41, %v2908_v44  ;;  %v2646_v62 = vrot.slane %v5301_v48, %v4154_v32  ;;  %v2653_v5 = vrot.slane %v5302_v14, %v4154_v32 }
 0x13c   :  { %3397 = vperm.xlu1 %3829, %v3164_v50   ;;  %v3467_v10 = vrot.slane %v3242_v27, %v5028_v13  ;;  %v5059_v28 = vsub.s32 %v3477_v19, %v4131_v11  ;;  %v2637_v23 = vcombine.low %v2629_v38, %v2636_v57  ;;  %v3491_v4 = vadd.s32 4294967200, %v4658_v31  ;;  %v5303_v38 = vld [vmem:[#allocation15_spill] sm:$0xff]  ;;  %v5304_v57 = vld [vmem:[#allocation16_spill] sm:$0xff] }
 0x13d   :  { %3349 = vperm.xlu0 %3828, %v2892_v18   ;;  %v3474_v51 = vrot.slane %v4998_v35, %v5043_v2  ;;  %v3498_v22 = vadd.s32 4294967192, %v4658_v31  ;;  %v3190_v8 = vrot.slane %v3182_v42, %v4154_v32  ;;  %v3197_v29 = vrot.slane %v3183_v6, %v4154_v32  ;;  %v3248_v46 = vpop.permute.xlu1 %3247 }
 0x13e   :  { %v3199_v49 = vcombine.low %v2106_v47, %v2113_v1  ;;  %v3469_v9 = vsel %vm3468_vm8, %v3467_v10, %v3462_v12  ;;  %v3181_v40 = vcombine.low %v3173_v56, %v3180_v54  ;;  %v2654_v26 = vcombine.low %v2646_v62, %v2653_v5 }
 0x13f   :  { %v3476_v21 = vsel %vm3475_vm9, %v3474_v51, %v3469_v9  ;;  %v3505_v35 = vadd.s32 4294967184, %v4658_v31  ;;  %v3481_v53 = vrot.slane %v3248_v46, %v5059_v28  ;;  %v5072_v50 = vsub.s32 %v3491_v4, %v4131_v11 }
 0x140   :  { %3352 = vperm.xlu1 %3829, %v2909_v20   ;;  %v2918_v47 = vrot.slane %v4908_v59, %v4154_v32  ;;  %v2925_v1 = vrot.slane %v4974_v0, %v4154_v32  ;;  %v3488_v42 = vrot.slane %v5025_v52, %v5046_v25  ;;  %v5081_v30 = vsub.s32 %v3498_v22, %v4131_v11  ;;  %v3263_v59 = vpop.permute.xlu0 %3262 }
 0x141   :  { %3304 = vperm.xlu0 %3828, %v2637_v23   ;;  %v3512_v7 = vadd.s32 4294967176, %v4658_v31  ;;  %v3198_v18 = vcombine.low %v3190_v8, %v3197_v29  ;;  %v3200_v41 = vcombine.low %v2120_v33, %v2127_v61  ;;  %v3483_v44 = vsel %vm3482_vm10, %v3481_v53, %v3476_v21  ;;  %v3254_v63 = vpop.permute.xlu1 %3253 }
 0x142   :  { %v3490_v0 = vsel %vm3489_vm11, %v3488_v42, %v3483_v44  ;;  %v5087_v19 = vsub.s32 %v3505_v35, %v4131_v11  ;;  %v2935_v52 = vrot.slane %v4864_v55, %v4154_v32  ;;  %v2942_v31 = vrot.slane %v4869_v37, %v4154_v32 }
 0x143   :  { %v3495_v33 = vrot.slane %v3254_v63, %v5072_v50  ;;  %v2926_v60 = vcombine.low %v2918_v47, %v2925_v1  ;;  %v2663_v58 = vrot.slane %v5303_v38, %v4154_v32  ;;  %v2670_v6 = vrot.slane %v5304_v57, %v4154_v32 }
 0x144   :  { %3307 = vperm.xlu1 %3829, %v2654_v26   ;;  %v3502_v61 = vrot.slane %v3257_v45, %v5081_v30  ;;  %v5100_v12 = vsub.s32 %v3512_v7, %v4131_v11  ;;  %v2943_v54 = vcombine.low %v2935_v52, %v2942_v31  ;;  %v3207_v48 = vrot.slane %v3199_v49, %v4154_v32  ;;  %v3269_v14 = vpop.permute.xlu0 %3268 }
 0x145   :  { %3400 = vperm.xlu0 %3828, %v3181_v40   ;;  %v3497_v55 = vsel %vm3496_vm12, %v3495_v33, %v3490_v0  ;;  %v3260_v37 = vpop.permute.xlu1 %3259  ;;  %v2671_v20 = vcombine.low %v2663_v58, %v2670_v6  ;;  %v3214_v62 = vrot.slane %v3200_v41, %v4154_v32  ;;  %v3526_v4 = vrot.slane %v3269_v14, %v4878_v34 }
 0x146   :  { %v3504_v56 = vsel %vm3503_vm13, %v3502_v61, %v3497_v55  ;;  %v3509_v27 = vrot.slane %v3260_v37, %v5087_v19  ;;  %v3516_v11 = vrot.slane %v3263_v59, %v5100_v12  ;;  %v3862_v8 = vmov 0.0  }
 0x147   :  { %v3215_v22 = vcombine.low %v3207_v48, %v3214_v62  ;;  %13 = vst [vmem:[#allocation2] sm:$0xf] %v3862_v8 }
 0x148   :  { %3403 = vperm.xlu1 %3829, %v3198_v18   ;;  %v3511_v5 = vsel %vm3510_vm14, %v3509_v27, %v3504_v56 }
 0x149   :  { %3355 = vperm.xlu0 %3828, %v2926_v60   ;;  %v5110_v10 = vsel %vm3517_vm15, %v3516_v11, %v3511_v5  ;;  %v3266_v23 = vpop.permute.xlu1 %3265 }
 0x14a   :  { %v3522_v51 = vrot.slane %v3266_v23, %v4817_v15 }
 0x14c   :  { %3358 = vperm.xlu1 %3829, %v2943_v54   ;;  %v3527_v45 = vsel %vm3419_vm1, %v3526_v4, %v3522_v51 }
 0x14d   :  { %3310 = vperm.xlu0 %3828, %v2671_v20   ;;  %v3272_v29 = vpop.permute.xlu1 %3271 }
 0x14e   :  { %v3531_v49 = vrot.slane %v3272_v29, %v4891_v39 }
 0x150   :  { %v3532_v9 = vsel %vm3426_vm2, %v3531_v49, %v3527_v45 }
 0x151   :  { %3406 = vperm.xlu0 %3828, %v3215_v22  }
 0x158   :  { %v3317_v40 = vpop.permute.xlu1 %3316 }
 0x159   :  { %v3314_v46 = vpop.permute.xlu0 %3313  ;;  %v3605_v21 = vrot.slane %v3317_v40, %v4878_v34 }
 0x15a   :  { %v3601_v26 = vrot.slane %v3314_v46, %v4817_v15 }
 0x15c   :  { %v3606_v35 = vsel %vm3419_vm1, %v3605_v21, %v3601_v26 }
 0x179   :  { %v3365_v53 = vpop.permute.xlu1 %3364 }
 0x17a   :  { %v3684_v47 = vrot.slane %v3365_v53, %v4878_v34  ;;  %v3362_v1 = vpop.permute.xlu0 %3361 }
 0x17b   :  { %v3680_v42 = vrot.slane %v3362_v1, %v4817_v15 }
 0x17d   :  { %v3685_v7 = vsel %vm3419_vm1, %v3684_v47, %v3680_v42  ;;  %v3368_v18 = vpop.permute.xlu1 %3367  ;;  %vm3787_vm1 = vcmask 1041408  }
 0x17e   :  { %v3320_v41 = vpop.permute.xlu0 %3319  ;;  %v3689_v49 = vrot.slane %v3368_v18, %v4891_v39 }
 0x17f   :  { %v3610_v44 = vrot.slane %v3320_v41, %v4891_v39 }
 0x180   :  { %v3690_v42 = vsel %vm3426_vm2, %v3689_v49, %v3685_v7 }
 0x181   :  { %v3611_v59 = vsel %vm3426_vm2, %v3610_v44, %v3606_v35  ;;  %v3323_v63 = vpop.permute.xlu1 %3322 }
 0x182   :  { %v3275_v0 = vpop.permute.xlu0 %3274  ;;  %v3615_v40 = vrot.slane %v3323_v63, %v4919_v16 }
 0x183   :  { %v3536_v52 = vrot.slane %v3275_v0, %v4919_v16 }
 0x184   :  { %v3616_v41 = vsel %vm3433_vm3, %v3615_v40, %v3611_v59 }
 0x185   :  { %v3537_v31 = vsel %vm3433_vm3, %v3536_v52, %v3532_v9  ;;  %v3278_v33 = vpop.permute.xlu1 %3277 }
 0x186   :  { %v3371_v60 = vpop.permute.xlu0 %3370  ;;  %v3541_v21 = vrot.slane %v3278_v33, %v4942_v43 }
 0x187   :  { %v3694_v46 = vrot.slane %v3371_v60, %v4919_v16 }
 0x189   :  { %v3374_v34 = vpop.permute.xlu1 %3373  ;;  %v3695_v16 = vsel %vm3433_vm3, %v3694_v46, %v3690_v42 }
 0x18a   :  { %v3326_v38 = vpop.permute.xlu0 %3325  ;;  %v3699_v26 = vrot.slane %v3374_v34, %v4942_v43 }
 0x18b   :  { %v3620_v35 = vrot.slane %v3326_v38, %v4942_v43  ;;  %v3542_v43 = vsel %vm3440_vm4, %v3541_v21, %v3537_v31 }
 0x18c   :  { %v3700_v0 = vsel %vm3440_vm4, %v3699_v26, %v3695_v16 }
 0x18d   :  { %v3329_v58 = vpop.permute.xlu1 %3328  ;;  %v3621_v52 = vsel %vm3440_vm4, %v3620_v35, %v3616_v41 }
 0x18e   :  { %v3281_v15 = vpop.permute.xlu0 %3280  ;;  %v3625_v53 = vrot.slane %v3329_v58, %v4956_v24 }
 0x18f   :  { %v3546_v47 = vrot.slane %v3281_v15, %v4956_v24 }
 0x190   :  { %v3626_v33 = vsel %vm3447_vm5, %v3625_v53, %v3621_v52 }
 0x191   :  { %v3547_v60 = vsel %vm3447_vm5, %v3546_v47, %v3542_v43 }
 0x192   :  { %v3377_v6 = vpop.permute.xlu0 %3376 }
 0x193   :  { %v3284_v57 = vpop.permute.xlu1 %3283  ;;  %v3704_v44 = vrot.slane %v3377_v6, %v4956_v24 }
 0x194   :  { %v3551_v39 = vrot.slane %v3284_v57, %v4991_v3 }
 0x195   :  { %v3705_v6 = vsel %vm3447_vm5, %v3704_v44, %v3700_v0 }
 0x196   :  { %v3552_v24 = vsel %vm3454_vm6, %v3551_v39, %v3547_v60 }
 0x197   :  { %v5127_v61 = vpop.permute.xlu1 %3379  ;;  %v3332_v55 = vpop.permute.xlu0 %3331 }
 0x198   :  { %v3630_v63 = vrot.slane %v3332_v55, %v4991_v3  ;;  %v3709_v31 = vrot.slane %v5127_v61, %v4991_v3 }
 0x19a   :  { %v3631_v55 = vsel %vm3454_vm6, %v3630_v63, %v3626_v33  ;;  %v3710_v40 = vsel %vm3454_vm6, %v3709_v31, %v3705_v6 }
 0x19b   :  { %v3335_v37 = vpop.permute.xlu1 %3334 }
 0x19c   :  { %v3287_v56 = vpop.permute.xlu0 %3286  ;;  %v3635_v7 = vrot.slane %v3335_v37, %v5016_v36 }
 0x19d   :  { %v3556_v59 = vrot.slane %v3287_v56, %v5016_v36 }
 0x19f   :  { %v5129_v54 = vpop.permute.xlu1 %3289 }
 0x1a0   :  { %v5131_v27 = vpop.permute.xlu0 %3382  ;;  %v3561_v58 = vrot.slane %v5129_v54, %v5028_v13 }
 0x1a1   :  { %v3714_v37 = vrot.slane %v5131_v27, %v5016_v36 }
 0x1a3   :  { %v5133_v20 = vpop.permute.xlu1 %3385 }
 0x1a4   :  { %v3338_v48 = vpop.permute.xlu0 %3337  ;;  %v3719_v3 = vrot.slane %v5133_v20, %v5028_v13 }
 0x1a5   :  { %v3640_v34 = vrot.slane %v3338_v48, %v5028_v13  ;;  %v3636_v48 = vsel %vm3461_vm7, %v3635_v7, %v3631_v55 }
 0x1a7   :  { %v3341_v62 = vpop.permute.xlu1 %3340  ;;  %v3641_v49 = vsel %vm3468_vm8, %v3640_v34, %v3636_v48 }
 0x1a8   :  { %v5135_v11 = vpop.permute.xlu0 %3292  ;;  %v3645_v15 = vrot.slane %v3341_v62, %v5043_v2  ;;  %v3557_v62 = vsel %vm3461_vm7, %v3556_v59, %v3552_v24 }
 0x1a9   :  { %v3566_v61 = vrot.slane %v5135_v11, %v5043_v2  ;;  %v3562_v13 = vsel %vm3468_vm8, %v3561_v58, %v3557_v62 }
 0x1aa   :  { %v3646_v20 = vsel %vm3475_vm9, %v3645_v15, %v3641_v49 }
 0x1ab   :  { %v5137_v14 = vpop.permute.xlu1 %3295  ;;  %v3567_v35 = vsel %vm3475_vm9, %v3566_v61, %v3562_v13 }
 0x1ac   :  { %v5139_v5 = vpop.permute.xlu0 %3388  ;;  %v3571_v36 = vrot.slane %v5137_v14, %v5059_v28 }
 0x1ad   :  { %v3724_v21 = vrot.slane %v5139_v5, %v5043_v2 }
 0x1af   :  { %v5141_v23 = vpop.permute.xlu1 %3391 }
 0x1b0   :  { %v3344_v4 = vpop.permute.xlu0 %3343  ;;  %v3729_v53 = vrot.slane %v5141_v23, %v5059_v28 }
 0x1b1   :  { %v3650_v56 = vrot.slane %v3344_v4, %v5059_v28 }
 0x1b3   :  { %v5143_v51 = vpop.permute.xlu1 %3346  ;;  %v3651_v26 = vsel %vm3482_vm10, %v3650_v56, %v3646_v20 }
 0x1b4   :  { %v5145_v22 = vpop.permute.xlu0 %3298  ;;  %v3655_v54 = vrot.slane %v5143_v51, %v5046_v25  ;;  %v3715_v51 = vsel %vm3461_vm7, %v3714_v37, %v3710_v40 }
 0x1b5   :  { %v3576_v42 = vrot.slane %v5145_v22, %v5046_v25 }
 0x1b6   :  { %v3656_v47 = vsel %vm3489_vm11, %v3655_v54, %v3651_v26 }
 0x1b7   :  { %v5147_v45 = vpop.permute.xlu1 %3301 }
 0x1b8   :  { %v5149_v8 = vpop.permute.xlu0 %3394  ;;  %v3581_v41 = vrot.slane %v5147_v45, %v5072_v50 }
 0x1b9   :  { %v3734_v2 = vrot.slane %v5149_v8, %v5046_v25 }
 0x1bb   :  { %v5151_v29 = vpop.permute.xlu1 %3397 }
 0x1bc   :  { %v3350_v9 = vpop.permute.xlu0 %3349  ;;  %v3739_v16 = vrot.slane %v5151_v29, %v5072_v50 }
 0x1bd   :  { %v3660_v27 = vrot.slane %v3350_v9, %v5072_v50  ;;  %v3720_v9 = vsel %vm3468_vm8, %v3719_v3, %v3715_v51 }
 0x1be   :  { %v3725_v63 = vsel %vm3475_vm9, %v3724_v21, %v3720_v9 }
 0x1bf   :  { %v3353_v1 = vpop.permute.xlu1 %3352  ;;  %v3661_v5 = vsel %vm3496_vm12, %v3660_v27, %v3656_v47  ;;  %v3730_v43 = vsel %vm3482_vm10, %v3729_v53, %v3725_v63 }
 0x1c0   :  { %v5163_v18 = vpop.permute.xlu0 %3304  ;;  %v3665_v11 = vrot.slane %v3353_v1, %v5081_v30  ;;  %v3572_v1 = vsel %vm3482_vm10, %v3571_v36, %v3567_v35  ;;  %v3735_v52 = vsel %vm3489_vm11, %v3734_v2, %v3730_v43 }
 0x1c1   :  { %v3586_v22 = vrot.slane %v5163_v18, %v5081_v30  ;;  %v3577_v0 = vsel %vm3489_vm11, %v3576_v42, %v3572_v1  ;;  %v3740_v33 = vsel %vm3496_vm12, %v3739_v16, %v3735_v52 }
 0x1c2   :  { %v3666_v28 = vsel %vm3503_vm13, %v3665_v11, %v3661_v5  ;;  %v3582_v7 = vsel %vm3496_vm12, %v3581_v41, %v3577_v0 }
 0x1c3   :  { %v5177_v38 = vpop.permute.xlu1 %3307  ;;  %v3587_v59 = vsel %vm3503_vm13, %v3586_v22, %v3582_v7 }
 0x1c4   :  { %v3401_v57 = vpop.permute.xlu0 %3400  ;;  %v3591_v45 = vrot.slane %v5177_v38, %v5087_v19 }
 0x1c5   :  { %v3744_v25 = vrot.slane %v3401_v57, %v5081_v30  ;;  %v14_v57 = vld [vmem:[#allocation2] sm:$0xf] }
 0x1c6   :  { %v3592_v38 = vsel %vm3510_vm14, %v3591_v45, %v3587_v59 }
 0x1c7   :  { %v3404_v4 = vpop.permute.xlu1 %3403 }
 0x1c8   :  { %v3356_v46 = vpop.permute.xlu0 %3355  ;;  %v3749_v50 = vrot.slane %v3404_v4, %v5087_v19 }
 0x1c9   :  { %v3670_v14 = vrot.slane %v3356_v46, %v5087_v19  ;;  %v3745_v19 = vsel %vm3503_vm13, %v3744_v25, %v3740_v33 }
 0x1ca   :  { %v3750_v24 = vsel %vm3510_vm14, %v3749_v50, %v3745_v19 }
 0x1cb   :  { %v3359_v39 = vpop.permute.xlu1 %3358  ;;  %v3671_v8 = vsel %vm3510_vm14, %v3670_v14, %v3666_v28 }
 0x1cc   :  { %v3675_v23 = vrot.slane %v3359_v39, %v5100_v12  ;;  %v3311_v44 = vpop.permute.xlu0 %3310 }
 0x1cd   :  { %v3596_v30 = vrot.slane %v3311_v44, %v5100_v12 }
 0x1ce   :  { %v3676_v29 = vsel %vm3517_vm15, %v3675_v23, %v3671_v8 }
 0x1cf   :  { %v3757_v18 = vsel %vm3756_vm0, %v3676_v29, %v5110_v10  ;;  %v3597_v31 = vsel %vm3517_vm15, %v3596_v30, %v3592_v38 }
 0x1d0   :  { %v3407_v60 = vpop.permute.xlu0 %3406 }
 0x1d1   :  { %v3754_v34 = vrot.slane %v3407_v60, %v5100_v12 }
 0x1d3   :  { %v3755_v10 = vsel %vm3517_vm15, %v3754_v34, %v3750_v24 }
 0x1d4   :  { %v3758_v58 = vsel %vm3756_vm0, %v3755_v10, %v3597_v31 }
 0x1d5   :  { %v3759_v15 = vcombine.low %v3757_v18, %v3758_v58 }
 0x1d7   :  { %v3766_v6 = vrot.slane %v3759_v15, %v4154_v32 }
 0x1d9   :  { %v3768_v55 = vadd.f32 %v3766_v6, %v14_v57 }
 0x1db   :  { %3769 = vst [vmem:[#allocation2] sm:$0xf] %v3768_v55 }
 0x1e2   :  { %v3773_v37 = vld [vmem:[#allocation2] sm:$0xf] }
 0x1e3   :  { %v3774_v56 = vmul.f32 0.015625, %v3773_v37 }
 0x1e5   :  { %v3775_v48 = vmul.f32 %v3774_v56, %v3774_v56 }
 0x1e7   :  { %v3783_v12 = vrot.slane %v3775_v48, %v4154_v32 }
 0x1e9   :  { %v3784_v3 = vcombine.high %v3783_v12, %v3783_v12  ;;  %v3788_v61 = vsel %vm3787_vm1, %v3783_v12, 0.0 }
 0x1eb   :  { %v3789_v54 = vsel %vm3787_vm1, %v3784_v3, 0.0 }
 0x1ec   :  { %v3790_v62 = vadd.f32 %v3789_v54, %v3788_v61 }
 0x1ee   :  { %3791 = vadd.xlane.f32.xlu1 %v3790_v62 }
 0x27b   :  { %v3792_v49 = vpop.xlane.xlu1 %3791 }
 0x27c   :  { %v3793_v36 = vmax.f32 %v3792_v49, 1e-24 }
 0x27e   :  { %3830 = vrsqrt.f32 %v3793_v36 }
 0x288   :  { %v3831_v27 = vpop.eup %3830 }
 0x289   :  { %v3802_v4 = vrot.slane %v3831_v27, %v4134_v17 }
 0x28b   :  { %v3804_v40 = vmul.f32 %v3802_v4, %v3774_v56 }
 0x28d   :  { %3805 = vst [vmem:[#allocation3] sm:$0xf] %v3804_v40 }
 0x28e   :  { %3843 = shalt.err (!%p3840_p4)
}
 0x28f   :  { %s3844_s22 = scalar_lea.hbm %s5269_s1, 64 }
 0x290   :  { %p3845_p5 = scmp.ne.s32.totalorder %s5269_s1, %s3844_s22  ;;  %p3848_p6 = scmp.lt.u32.totalorder %s3844_s22, %s5269_s1 }
 0x292   :  { %p3850_p7 = pnand %p3848_p6, %p3845_p5 }
 0x294   :  { %3853 = shalt.err (!%p3850_p7)
}
 0x295   :  { %3815 = dma.vmem_to_hbm [thread:$0]  %s3813_s18, 64, %s5269_s1, [#allocation4]  }
 0x296   :  { %3854 = dma.done.wait [#allocation4], 64  }
 0x297   :  { %3855 = vsyncadd [#allocation4], 4294967232 }
 0x298   :  { %3819 = vsyncpa [#allocation4], 1 }

</bundles_post_ra>
